<compile_context>
chip_gen: v7x
topology: tpu7x:2x2x1
jax: 0.10.0
libtpu: 0.0.40
codegen_flags: <defaults>
</compile_context>

<pallas_src>
import math
import functools

import jax
import jax.numpy as jnp
from jax.experimental import pallas as pl
from jax.experimental.pallas import tpu as pltpu  # noqa: F401  (TPU backend assumed)


# ------------------------------ in-kernel helpers ------------------------------

def _layer_norm(v, w, b, eps=1e-5):
    """One-pass LayerNorm over the last axis (var = E[x^2] - mu^2)."""
    mu = jnp.mean(v, axis=-1, keepdims=True)
    ms = jnp.mean(v * v, axis=-1, keepdims=True)
    var = ms - mu * mu
    return (v - mu) * jax.lax.rsqrt(var + eps) * w + b


def _split_heads(x2d, batch, seq, num_heads, head_dim):
    """[batch*seq, num_heads*head_dim] -> [batch*num_heads, seq, head_dim] (static slices)."""
    parts = []
    for b in range(batch):
        rows = x2d[b * seq:(b + 1) * seq]
        for h in range(num_heads):
            parts.append(rows[:, h * head_dim:(h + 1) * head_dim])
    return jnp.stack(parts, axis=0)


def _combine_heads(o, batch, num_heads):
    """[batch*num_heads, seq, D] -> [batch*seq, D] (sum heads per batch; out-proj already applied)."""
    rows = [jnp.sum(o[b * num_heads:(b + 1) * num_heads], axis=0) for b in range(batch)]
    return jnp.concatenate(rows, axis=0) if batch > 1 else rows[0]


def _attention(q_h, k_h, v_h, w_out_h, bias):
    """Head-batched attention with the output projection folded per head.

    q_h: [BH, Nq, hd], k_h/v_h: [BH, Nk, hd], w_out_h: [BH, hd, D],
    bias: [BH, 1, Nk] additive score bias (0 valid / -1e9 masked) or None.
    Returns per-head projected outputs [BH, Nq, D] (sum over heads done by caller).
    """
    s = jnp.einsum('bqd,bkd->bqk', q_h, k_h, preferred_element_type=jnp.float32)
    if bias is not None:
        s = s + bias
    m = jnp.max(s, axis=-1, keepdims=True)
    e = jnp.exp(s - m)
    p = e * pl.reciprocal(jnp.sum(e, axis=-1, keepdims=True), approx=True)
    o = jnp.einsum('bqk,bkd->bqd', p, v_h, preferred_element_type=jnp.float32)
    return jnp.einsum('bqd,bde->bqe', o, w_out_h, preferred_element_type=jnp.float32)


# --------------------------------- Pallas kernel --------------------------------

def _decoder_kernel(x_ref, e_ref, f_ref, p_ref, bias_ref,
                    w_si_ref, w_ci_ref, w_so_ref, w_co_ref, w1_ref, w2_ref, vec_ref,
                    out_ref, *, batch, n_slots, n_feat, num_heads, feat_dim, hidden_dim):
    D, H, nh = feat_dim, hidden_dim, num_heads
    hd = D // nh

    # Packed 1-row parameters (row layout matches _pack_vectors in the wrapper).
    vec = vec_ref[...]
    b_si = vec[0:1, 0:3 * D]       # self in_proj bias (Q slice pre-scaled)
    b_ci = vec[1:2, 0:3 * D]       # cross in_proj bias (Q slice pre-scaled)
    b_so = vec[2:3, 0:D]           # self out_proj bias
    b_co = vec[3:4, 0:D]           # cross out_proj bias
    ln1w, ln1b = vec[4:5, 0:D], vec[5:6, 0:D]
    ln2w, ln2b = vec[6:7, 0:D], vec[7:8, 0:D]
    ln3w, ln3b = vec[8:9, 0:D], vec[9:10, 0:D]
    b1 = vec[10:11, 0:H]
    b2 = vec[11:12, 0:D]

    x = x_ref[...]            # [B*N, D] slots (batch-major tokens)
    e = e_ref[...]            # [B*N, D] slot embeddings
    f = f_ref[...]            # [B*S, D] features
    p = p_ref[...]            # [B*S, D] position encodings
    bias = bias_ref[...]      # [B*nh, 1, S] additive key-padding bias

    # ---------------- self-attention block ----------------
    qk_in = x + e
    qk = jnp.dot(qk_in, w_si_ref[:, 0:2 * D],
                 preferred_element_type=jnp.float32) + b_si[:, 0:2 * D]   # fused Q+K
    v = jnp.dot(x, w_si_ref[:, 2 * D:3 * D],
                preferred_element_type=jnp.float32) + b_si[:, 2 * D:3 * D]
    q_h = _split_heads(qk[:, 0:D], batch, n_slots, nh, hd)
    k_h = _split_heads(qk[:, D:2 * D], batch, n_slots, nh, hd)
    v_h = _split_heads(v, batch, n_slots, nh, hd)
    o = _attention(q_h, k_h, v_h, w_so_ref[...], None)
    delta = _combine_heads(o, batch, nh) + b_so
    x = _layer_norm(x + delta, ln1w, ln1b)

    # ---------------- cross-attention block ----------------
    q_in = x + e
    kv_in = f + p
    q = jnp.dot(q_in, w_ci_ref[:, 0:D],
                preferred_element_type=jnp.float32) + b_ci[:, 0:D]
    k = jnp.dot(kv_in, w_ci_ref[:, D:2 * D],
                preferred_element_type=jnp.float32) + b_ci[:, D:2 * D]
    v = jnp.dot(f, w_ci_ref[:, 2 * D:3 * D],
                preferred_element_type=jnp.float32) + b_ci[:, 2 * D:3 * D]
    q_h = _split_heads(q, batch, n_slots, nh, hd)
    k_h = _split_heads(k, batch, n_feat, nh, hd)
    v_h = _split_heads(v, batch, n_feat, nh, hd)
    o = _attention(q_h, k_h, v_h, w_co_ref[...], bias)
    delta = _combine_heads(o, batch, nh) + b_co
    x = _layer_norm(x + delta, ln2w, ln2b)

    # ---------------- FFN block ----------------
    hid = jnp.maximum(jnp.dot(x, w1_ref[...], preferred_element_type=jnp.float32) + b1, 0.0)
    delta = jnp.dot(hid, w2_ref[...], preferred_element_type=jnp.float32) + b2
    x = _layer_norm(x + delta, ln3w, ln3b)

    out_ref[...] = x


# ----------------------------------- wrapper ------------------------------------

def _pack_vectors(rows, width):
    padded = [jnp.pad(r.astype(jnp.float32), ((0, 0), (0, width - r.shape[1]))) for r in rows]
    return jnp.concatenate(padded, axis=0)


@functools.partial(jax.jit, static_argnums=6)
def global_decoder_layer(slots, slot_embeds, features, feature_masks, pos_encodings,
                         params, num_heads):
    """slots/slot_embeds: [N, B, D], features/pos_encodings: [S, B, D],
    feature_masks: bool [B, fH, fW]. Returns updated slots [N, B, D]."""
    N, B, D = slots.shape
    S = features.shape[0]
    (siw, sib, sow, sob,
     ciw, cib, cow, cob,
     ln1w, ln1b, ln2w, ln2b,
     l1w, l1b, l2w, l2b,
     ln3w, ln3b) = params
    H = l1w.shape[0]
    hd = D // num_heads
    scale = 1.0 / math.sqrt(hd)
    f32 = jnp.float32

    # Tokens, batch-major and flattened (layout plumbing stays in XLA, outside the kernel).
    x_tok = jnp.transpose(slots, (1, 0, 2)).reshape(B * N, D).astype(f32)
    e_tok = jnp.transpose(slot_embeds, (1, 0, 2)).reshape(B * N, D).astype(f32)
    f_tok = jnp.transpose(features, (1, 0, 2)).reshape(B * S, D).astype(f32)
    p_tok = jnp.transpose(pos_encodings, (1, 0, 2)).reshape(B * S, D).astype(f32)

    # key_padding_mask -> additive bias (0 = attend, -1e9 = masked), replicated per head.
    key_bias = (feature_masks.reshape(B, S).astype(f32) - 1.0) * 1e9        # [B, S]
    bias_h = jnp.repeat(key_bias, num_heads, axis=0)[:, None, :]            # [B*nh, 1, S]

    # Pre-transposed projection weights; 1/sqrt(hd) folded into the Q columns.
    def prep_in_proj(w, b):
        wt = w.T.astype(f32)                                                # [D, 3D]
        bt = b.astype(f32)                                                  # [1, 3D]
        wt = jnp.concatenate([wt[:, :D] * scale, wt[:, D:]], axis=1)
        bt = jnp.concatenate([bt[:, :D] * scale, bt[:, D:]], axis=1)
        return wt, bt

    w_si, b_si = prep_in_proj(siw, sib)
    w_ci, b_ci = prep_in_proj(ciw, cib)
    # Out-proj reshaped per head and tiled over the batch: [B*nh, hd, D].
    w_so_h = jnp.tile(sow.T.astype(f32).reshape(num_heads, hd, D), (B, 1, 1))
    w_co_h = jnp.tile(cow.T.astype(f32).reshape(num_heads, hd, D), (B, 1, 1))
    w1 = l1w.T.astype(f32)                                                  # [D, H]
    w2 = l2w.T.astype(f32)                                                  # [H, D]

    # Pack the 12 small 1-row parameters into a single [12, width] input.
    width = max(3 * D, H)
    vec = _pack_vectors([b_si, b_ci, sob, cob, ln1w, ln1b, ln2w, ln2b,
                         ln3w, ln3b, l1b, l2b], width)

    kernel = functools.partial(
        _decoder_kernel, batch=B, n_slots=N, n_feat=S,
        num_heads=num_heads, feat_dim=D, hidden_dim=H)

    # Single invocation (no grid): every input is a full-array VMEM block.
    out = pl.pallas_call(
        kernel,
        out_shape=jax.ShapeDtypeStruct((B * N, D), f32),
    )(x_tok, e_tok, f_tok, p_tok, bias_h,
      w_si, w_ci, w_so_h, w_co_h, w1, w2, vec)

    return jnp.transpose(out.reshape(B, N, D), (1, 0, 2))                   # [N, B, D]


# ------------------------------- pure-JAX reference ------------------------------
# Faithful PyTorch math (per-batch, per-head loop, exact softmax, -inf masking);
# used only to validate the kernel.

def _layer_norm_ref(v, w, b, eps=1e-5):
    mu = jnp.mean(v, axis=-1, keepdims=True)
    var = jnp.mean(jnp.square(v - mu), axis=-1, keepdims=True)
    return (v - mu) * jax.lax.rsqrt(var + eps) * w + b


def _softmax_ref(s):
    m = jnp.max(s, axis=-1, keepdims=True)
    e = jnp.exp(s - m)
    return e / jnp.sum(e, axis=-1, keepdims=True)


def _mha_ref(q_in, k_in, v_in, in_w, in_b, out_w, out_b, num_heads, key_valid=None):
    D = q_in.shape[-1]
    hd = D // num_heads
    scale = 1.0 / math.sqrt(hd)
    q = q_in @ in_w[0:D].T + in_b[:, 0:D]
    k = k_in @ in_w[D:2 * D].T + in_b[:, D:2 * D]
    v = v_in @ in_w[2 * D:3 * D].T + in_b[:, 2 * D:3 * D]
    heads = []
    for h in range(num_heads):
        qh = q[:, h * hd:(h + 1) * hd] * scale
        kh = k[:, h * hd:(h + 1) * hd]
        vh = v[:, h * hd:(h + 1) * hd]
        s = qh @ kh.T
        if key_valid is not None:
            s = jnp.where(key_valid > 0.0, s, -jnp.inf)
        heads.append(_softmax_ref(s) @ vh)
    attn = jnp.concatenate(heads, axis=-1)
    return attn @ out_w.T + out_b


def _decoder_layer_single_ref(x, e, f, p, key_valid, params, num_heads):
    (siw, sib, sow, sob, ciw, cib, cow, cob,
     ln1w, ln1b, ln2w, ln2b, l1w, l1b, l2w, l2b, ln3w, ln3b) = params
    qk = x + e
    d = _mha_ref(qk, qk, x, siw, sib, sow, sob, num_heads)
    x = _layer_norm_ref(x + d, ln1w, ln1b)
    q = x + e
    k = f + p
    d = _mha_ref(q, k, f, ciw, cib, cow, cob, num_heads, key_valid=key_valid)
    x = _layer_norm_ref(x + d, ln2w, ln2b)
    hdn = jnp.maximum(x @ l1w.T + l1b, 0.0)
    d = hdn @ l2w.T + l2b
    return _layer_norm_ref(x + d, ln3w, ln3b)


def global_decoder_layer_ref(slots, slot_embeds, features, feature_masks, pos_encodings,
                             params, num_heads):
    N, B, D = slots.shape
    S = features.shape[0]
    key_valid = feature_masks.reshape(B, 1, S).astype(jnp.float32)
    outs = []
    for b in range(B):
        outs.append(_decoder_layer_single_ref(
            slots[:, b].astype(jnp.float32), slot_embeds[:, b].astype(jnp.float32),
            features[:, b].astype(jnp.float32), pos_encodings[:, b].astype(jnp.float32),
            key_valid[b], params, num_heads))
    return jnp.stack(outs, axis=1)                                          # [N, B, D]


# ------------------------------------- main --------------------------------------

if __name__ == "__main__":
    # Module hyper-params (small, consistent with the PyTorch __init__).
    feat_dim, num_heads, ffn_hidden = 32, 4, 64
    num_slots, batch, fH, fW = 8, 2, 4, 4
    S = fH * fW

    key = jax.random.PRNGKey(0)
    ks = jax.random.split(key, 16)

    def w(k, shape, scale=0.02):
        return (scale * jax.random.normal(k, shape)).astype(jnp.float32)

    D, H = feat_dim, ffn_hidden
    params = (
        w(ks[0], (3 * D, D)), jnp.zeros((1, 3 * D), jnp.float32),   # self_attn in_proj
        w(ks[1], (D, D)),     jnp.zeros((1, D), jnp.float32),       # self_attn out_proj
        w(ks[2], (3 * D, D)), jnp.zeros((1, 3 * D), jnp.float32),   # cross_attn in_proj
        w(ks[3], (D, D)),     jnp.zeros((1, D), jnp.float32),       # cross_attn out_proj
        jnp.ones((1, D), jnp.float32), jnp.zeros((1, D), jnp.float32),   # norm1
        jnp.ones((1, D), jnp.float32), jnp.zeros((1, D), jnp.float32),   # norm2
        w(ks[4], (H, D)),     jnp.zeros((1, H), jnp.float32),       # linear1 ([out,in])
        w(ks[5], (D, H)),     jnp.zeros((1, D), jnp.float32),       # linear2 ([out,in])
        jnp.ones((1, D), jnp.float32), jnp.zeros((1, D), jnp.float32),   # norm3
    )

    slots = jax.random.normal(ks[6], (num_slots, batch, D), jnp.float32)
    slot_embeds = jax.random.normal(ks[7], (num_slots, batch, D), jnp.float32)
    features = jax.random.normal(ks[8], (S, batch, D), jnp.float32)
    pos_encodings = jax.random.normal(ks[9], (S, batch, D), jnp.float32)
    feature_masks = jax.random.bernoulli(ks[10], 0.75, (batch, fH, fW))
    feature_masks = feature_masks.at[:, 0, 0].set(True)   # keep at least one valid key

    out = global_decoder_layer(slots, slot_embeds, features, feature_masks,
                               pos_encodings, params, num_heads)
    out = jax.block_until_ready(out)

    ref = global_decoder_layer_ref(slots, slot_embeds, features, feature_masks,
                                   pos_encodings, params, num_heads)
    assert out.shape == (num_slots, batch, feat_dim)
    assert jnp.allclose(out, ref, atol=1e-3, rtol=1e-3), "mismatch vs pure-JAX reference"

    print("KERNEL_OK")
</pallas_src>

<mosaic_0001>
module attributes {stable_mosaic.version = 11 : i64} {
  func.func @_decoder_kernel(%arg0: memref<16x32xf32, #tpu.memory_space<vmem>>, %arg1: memref<16x32xf32, #tpu.memory_space<vmem>>, %arg2: memref<32x32xf32, #tpu.memory_space<vmem>>, %arg3: memref<32x32xf32, #tpu.memory_space<vmem>>, %arg4: memref<8x1x16xf32, #tpu.memory_space<vmem>>, %arg5: memref<32x96xf32, #tpu.memory_space<vmem>>, %arg6: memref<32x96xf32, #tpu.memory_space<vmem>>, %arg7: memref<8x8x32xf32, #tpu.memory_space<vmem>>, %arg8: memref<8x8x32xf32, #tpu.memory_space<vmem>>, %arg9: memref<32x64xf32, #tpu.memory_space<vmem>>, %arg10: memref<64x32xf32, #tpu.memory_space<vmem>>, %arg11: memref<12x96xf32, #tpu.memory_space<vmem>>, %arg12: memref<16x32xf32, #tpu.memory_space<vmem>>) attributes {dimension_semantics = [], scalar_prefetch = 0 : i64, scratch_operands = 0 : i64, tpu.core_type = #tpu.core_type<tc>} {
    %c0 = arith.constant 0 : index
    %c0_0 = arith.constant 0 : index
    %0 = vector.load %arg11[%c0, %c0_0] : memref<12x96xf32, #tpu.memory_space<vmem>>, vector<12x96xf32>
    %1 = vector.extract_strided_slice %0 {offsets = [0, 0], sizes = [1, 96], strides = [1, 1]} : vector<12x96xf32> to vector<1x96xf32>
    %2 = vector.extract_strided_slice %0 {offsets = [1, 0], sizes = [1, 96], strides = [1, 1]} : vector<12x96xf32> to vector<1x96xf32>
    %3 = vector.extract_strided_slice %0 {offsets = [2, 0], sizes = [1, 32], strides = [1, 1]} : vector<12x96xf32> to vector<1x32xf32>
    %4 = vector.extract_strided_slice %0 {offsets = [3, 0], sizes = [1, 32], strides = [1, 1]} : vector<12x96xf32> to vector<1x32xf32>
    %5 = vector.extract_strided_slice %0 {offsets = [4, 0], sizes = [1, 32], strides = [1, 1]} : vector<12x96xf32> to vector<1x32xf32>
    %6 = vector.extract_strided_slice %0 {offsets = [5, 0], sizes = [1, 32], strides = [1, 1]} : vector<12x96xf32> to vector<1x32xf32>
    %7 = vector.extract_strided_slice %0 {offsets = [6, 0], sizes = [1, 32], strides = [1, 1]} : vector<12x96xf32> to vector<1x32xf32>
    %8 = vector.extract_strided_slice %0 {offsets = [7, 0], sizes = [1, 32], strides = [1, 1]} : vector<12x96xf32> to vector<1x32xf32>
    %9 = vector.extract_strided_slice %0 {offsets = [8, 0], sizes = [1, 32], strides = [1, 1]} : vector<12x96xf32> to vector<1x32xf32>
    %10 = vector.extract_strided_slice %0 {offsets = [9, 0], sizes = [1, 32], strides = [1, 1]} : vector<12x96xf32> to vector<1x32xf32>
    %11 = vector.extract_strided_slice %0 {offsets = [10, 0], sizes = [1, 64], strides = [1, 1]} : vector<12x96xf32> to vector<1x64xf32>
    %12 = vector.extract_strided_slice %0 {offsets = [11, 0], sizes = [1, 32], strides = [1, 1]} : vector<12x96xf32> to vector<1x32xf32>
    %c0_1 = arith.constant 0 : index
    %c0_2 = arith.constant 0 : index
    %13 = vector.load %arg0[%c0_1, %c0_2] : memref<16x32xf32, #tpu.memory_space<vmem>>, vector<16x32xf32>
    %c0_3 = arith.constant 0 : index
    %c0_4 = arith.constant 0 : index
    %14 = vector.load %arg1[%c0_3, %c0_4] : memref<16x32xf32, #tpu.memory_space<vmem>>, vector<16x32xf32>
    %c0_5 = arith.constant 0 : index
    %c0_6 = arith.constant 0 : index
    %15 = vector.load %arg2[%c0_5, %c0_6] : memref<32x32xf32, #tpu.memory_space<vmem>>, vector<32x32xf32>
    %c0_7 = arith.constant 0 : index
    %c0_8 = arith.constant 0 : index
    %16 = vector.load %arg3[%c0_7, %c0_8] : memref<32x32xf32, #tpu.memory_space<vmem>>, vector<32x32xf32>
    %c0_9 = arith.constant 0 : index
    %c0_10 = arith.constant 0 : index
    %c0_11 = arith.constant 0 : index
    %17 = vector.load %arg4[%c0_9, %c0_10, %c0_11] : memref<8x1x16xf32, #tpu.memory_space<vmem>>, vector<8x1x16xf32>
    %18 = arith.addf %13, %14 : vector<16x32xf32>
    %c0_12 = arith.constant 0 : index
    %c0_13 = arith.constant 0 : index
    %19 = vector.load %arg5[%c0_12, %c0_13] : memref<32x96xf32, #tpu.memory_space<vmem>>, vector<32x64xf32>
    %cst = arith.constant dense<0.000000e+00> : vector<16x64xf32>
    %20 = tpu.matmul %18, %19, %cst {dimension_numbers = #tpu.dot_dimension_numbers<[1], [0], [0], [1], [0, 0, 1, 1], [], []>} : vector<16x32xf32>, vector<32x64xf32>, vector<16x64xf32> -> vector<16x64xf32>
    %21 = vector.extract_strided_slice %1 {offsets = [0, 0], sizes = [1, 64], strides = [1, 1]} : vector<1x96xf32> to vector<1x64xf32>
    %22 = vector.broadcast %21 : vector<1x64xf32> to vector<16x64xf32>
    %23 = arith.addf %20, %22 : vector<16x64xf32>
    %c0_14 = arith.constant 0 : index
    %c64 = arith.constant 64 : index
    %24 = vector.load %arg5[%c0_14, %c64] : memref<32x96xf32, #tpu.memory_space<vmem>>, vector<32x32xf32>
    %cst_15 = arith.constant dense<0.000000e+00> : vector<16x32xf32>
    %25 = tpu.matmul %13, %24, %cst_15 {dimension_numbers = #tpu.dot_dimension_numbers<[1], [0], [0], [1], [0, 0, 1, 1], [], []>} : vector<16x32xf32>, vector<32x32xf32>, vector<16x32xf32> -> vector<16x32xf32>
    %26 = vector.extract_strided_slice %1 {offsets = [0, 64], sizes = [1, 32], strides = [1, 1]} : vector<1x96xf32> to vector<1x32xf32>
    %27 = vector.broadcast %26 : vector<1x32xf32> to vector<16x32xf32>
    %28 = arith.addf %25, %27 : vector<16x32xf32>
    %29 = vector.extract_strided_slice %23 {offsets = [0, 0], sizes = [16, 32], strides = [1, 1]} : vector<16x64xf32> to vector<16x32xf32>
    %30 = vector.extract_strided_slice %29 {offsets = [0, 0], sizes = [8, 32], strides = [1, 1]} : vector<16x32xf32> to vector<8x32xf32>
    %31 = vector.extract_strided_slice %30 {offsets = [0, 0], sizes = [8, 8], strides = [1, 1]} : vector<8x32xf32> to vector<8x8xf32>
    %32 = vector.extract_strided_slice %30 {offsets = [0, 8], sizes = [8, 8], strides = [1, 1]} : vector<8x32xf32> to vector<8x8xf32>
    %33 = vector.extract_strided_slice %30 {offsets = [0, 16], sizes = [8, 8], strides = [1, 1]} : vector<8x32xf32> to vector<8x8xf32>
    %34 = vector.extract_strided_slice %30 {offsets = [0, 24], sizes = [8, 8], strides = [1, 1]} : vector<8x32xf32> to vector<8x8xf32>
    %35 = vector.extract_strided_slice %29 {offsets = [8, 0], sizes = [8, 32], strides = [1, 1]} : vector<16x32xf32> to vector<8x32xf32>
    %36 = vector.extract_strided_slice %35 {offsets = [0, 0], sizes = [8, 8], strides = [1, 1]} : vector<8x32xf32> to vector<8x8xf32>
    %37 = vector.extract_strided_slice %35 {offsets = [0, 8], sizes = [8, 8], strides = [1, 1]} : vector<8x32xf32> to vector<8x8xf32>
    %38 = vector.extract_strided_slice %35 {offsets = [0, 16], sizes = [8, 8], strides = [1, 1]} : vector<8x32xf32> to vector<8x8xf32>
    %39 = vector.extract_strided_slice %35 {offsets = [0, 24], sizes = [8, 8], strides = [1, 1]} : vector<8x32xf32> to vector<8x8xf32>
    %40 = vector.shape_cast %31 : vector<8x8xf32> to vector<1x8x8xf32>
    %41 = vector.shape_cast %32 : vector<8x8xf32> to vector<1x8x8xf32>
    %42 = vector.shape_cast %33 : vector<8x8xf32> to vector<1x8x8xf32>
    %43 = vector.shape_cast %34 : vector<8x8xf32> to vector<1x8x8xf32>
    %44 = vector.shape_cast %36 : vector<8x8xf32> to vector<1x8x8xf32>
    %45 = vector.shape_cast %37 : vector<8x8xf32> to vector<1x8x8xf32>
    %46 = vector.shape_cast %38 : vector<8x8xf32> to vector<1x8x8xf32>
    %47 = vector.shape_cast %39 : vector<8x8xf32> to vector<1x8x8xf32>
    %48 = tpu.concatenate %40, %41, %42, %43, %44, %45, %46, %47 in 0 : vector<1x8x8xf32>, vector<1x8x8xf32>, vector<1x8x8xf32>, vector<1x8x8xf32>, vector<1x8x8xf32>, vector<1x8x8xf32>, vector<1x8x8xf32>, vector<1x8x8xf32> -> vector<8x8x8xf32>
    %49 = vector.extract_strided_slice %23 {offsets = [0, 32], sizes = [16, 32], strides = [1, 1]} : vector<16x64xf32> to vector<16x32xf32>
    %50 = vector.extract_strided_slice %49 {offsets = [0, 0], sizes = [8, 32], strides = [1, 1]} : vector<16x32xf32> to vector<8x32xf32>
    %51 = vector.extract_strided_slice %50 {offsets = [0, 0], sizes = [8, 8], strides = [1, 1]} : vector<8x32xf32> to vector<8x8xf32>
    %52 = vector.extract_strided_slice %50 {offsets = [0, 8], sizes = [8, 8], strides = [1, 1]} : vector<8x32xf32> to vector<8x8xf32>
    %53 = vector.extract_strided_slice %50 {offsets = [0, 16], sizes = [8, 8], strides = [1, 1]} : vector<8x32xf32> to vector<8x8xf32>
    %54 = vector.extract_strided_slice %50 {offsets = [0, 24], sizes = [8, 8], strides = [1, 1]} : vector<8x32xf32> to vector<8x8xf32>
    %55 = vector.extract_strided_slice %49 {offsets = [8, 0], sizes = [8, 32], strides = [1, 1]} : vector<16x32xf32> to vector<8x32xf32>
    %56 = vector.extract_strided_slice %55 {offsets = [0, 0], sizes = [8, 8], strides = [1, 1]} : vector<8x32xf32> to vector<8x8xf32>
    %57 = vector.extract_strided_slice %55 {offsets = [0, 8], sizes = [8, 8], strides = [1, 1]} : vector<8x32xf32> to vector<8x8xf32>
    %58 = vector.extract_strided_slice %55 {offsets = [0, 16], sizes = [8, 8], strides = [1, 1]} : vector<8x32xf32> to vector<8x8xf32>
    %59 = vector.extract_strided_slice %55 {offsets = [0, 24], sizes = [8, 8], strides = [1, 1]} : vector<8x32xf32> to vector<8x8xf32>
    %60 = vector.shape_cast %51 : vector<8x8xf32> to vector<1x8x8xf32>
    %61 = vector.shape_cast %52 : vector<8x8xf32> to vector<1x8x8xf32>
    %62 = vector.shape_cast %53 : vector<8x8xf32> to vector<1x8x8xf32>
    %63 = vector.shape_cast %54 : vector<8x8xf32> to vector<1x8x8xf32>
    %64 = vector.shape_cast %56 : vector<8x8xf32> to vector<1x8x8xf32>
    %65 = vector.shape_cast %57 : vector<8x8xf32> to vector<1x8x8xf32>
    %66 = vector.shape_cast %58 : vector<8x8xf32> to vector<1x8x8xf32>
    %67 = vector.shape_cast %59 : vector<8x8xf32> to vector<1x8x8xf32>
    %68 = tpu.concatenate %60, %61, %62, %63, %64, %65, %66, %67 in 0 : vector<1x8x8xf32>, vector<1x8x8xf32>, vector<1x8x8xf32>, vector<1x8x8xf32>, vector<1x8x8xf32>, vector<1x8x8xf32>, vector<1x8x8xf32>, vector<1x8x8xf32> -> vector<8x8x8xf32>
    %69 = vector.extract_strided_slice %28 {offsets = [0, 0], sizes = [8, 32], strides = [1, 1]} : vector<16x32xf32> to vector<8x32xf32>
    %70 = vector.extract_strided_slice %69 {offsets = [0, 0], sizes = [8, 8], strides = [1, 1]} : vector<8x32xf32> to vector<8x8xf32>
    %71 = vector.extract_strided_slice %69 {offsets = [0, 8], sizes = [8, 8], strides = [1, 1]} : vector<8x32xf32> to vector<8x8xf32>
    %72 = vector.extract_strided_slice %69 {offsets = [0, 16], sizes = [8, 8], strides = [1, 1]} : vector<8x32xf32> to vector<8x8xf32>
    %73 = vector.extract_strided_slice %69 {offsets = [0, 24], sizes = [8, 8], strides = [1, 1]} : vector<8x32xf32> to vector<8x8xf32>
    %74 = vector.extract_strided_slice %28 {offsets = [8, 0], sizes = [8, 32], strides = [1, 1]} : vector<16x32xf32> to vector<8x32xf32>
    %75 = vector.extract_strided_slice %74 {offsets = [0, 0], sizes = [8, 8], strides = [1, 1]} : vector<8x32xf32> to vector<8x8xf32>
    %76 = vector.extract_strided_slice %74 {offsets = [0, 8], sizes = [8, 8], strides = [1, 1]} : vector<8x32xf32> to vector<8x8xf32>
    %77 = vector.extract_strided_slice %74 {offsets = [0, 16], sizes = [8, 8], strides = [1, 1]} : vector<8x32xf32> to vector<8x8xf32>
    %78 = vector.extract_strided_slice %74 {offsets = [0, 24], sizes = [8, 8], strides = [1, 1]} : vector<8x32xf32> to vector<8x8xf32>
    %79 = vector.shape_cast %70 : vector<8x8xf32> to vector<1x8x8xf32>
    %80 = vector.shape_cast %71 : vector<8x8xf32> to vector<1x8x8xf32>
    %81 = vector.shape_cast %72 : vector<8x8xf32> to vector<1x8x8xf32>
    %82 = vector.shape_cast %73 : vector<8x8xf32> to vector<1x8x8xf32>
    %83 = vector.shape_cast %75 : vector<8x8xf32> to vector<1x8x8xf32>
    %84 = vector.shape_cast %76 : vector<8x8xf32> to vector<1x8x8xf32>
    %85 = vector.shape_cast %77 : vector<8x8xf32> to vector<1x8x8xf32>
    %86 = vector.shape_cast %78 : vector<8x8xf32> to vector<1x8x8xf32>
    %87 = tpu.concatenate %79, %80, %81, %82, %83, %84, %85, %86 in 0 : vector<1x8x8xf32>, vector<1x8x8xf32>, vector<1x8x8xf32>, vector<1x8x8xf32>, vector<1x8x8xf32>, vector<1x8x8xf32>, vector<1x8x8xf32>, vector<1x8x8xf32> -> vector<8x8x8xf32>
    %c0_16 = arith.constant 0 : index
    %c0_17 = arith.constant 0 : index
    %c0_18 = arith.constant 0 : index
    %88 = vector.load %arg7[%c0_16, %c0_17, %c0_18] : memref<8x8x32xf32, #tpu.memory_space<vmem>>, vector<8x8x32xf32>
    "tpu.trace_start"() <{level = 10 : i32, message = "bqd,bkd->bqk"}> : () -> ()
    %cst_19 = arith.constant dense<0.000000e+00> : vector<8x8x8xf32>
    %89 = tpu.matmul %48, %68, %cst_19 {dimension_numbers = #tpu.dot_dimension_numbers<[2], [2], [1], [1], [0, 0, 0, 1, 1, 1], [0], [0]>} : vector<8x8x8xf32>, vector<8x8x8xf32>, vector<8x8x8xf32> -> vector<8x8x8xf32>
    "tpu.trace_stop"() : () -> ()
    %cst_20 = arith.constant dense<0xFF800000> : vector<8x8xf32>
    %90 = vector.multi_reduction <maximumf>, %89, %cst_20 [2] : vector<8x8x8xf32> to vector<8x8xf32>
    %91 = vector.shape_cast %90 : vector<8x8xf32> to vector<8x8x1xf32>
    %92 = vector.broadcast %91 : vector<8x8x1xf32> to vector<8x8x8xf32>
    %93 = arith.subf %89, %92 : vector<8x8x8xf32>
    %94 = math.exp %93 : vector<8x8x8xf32>
    %cst_21 = arith.constant dense<0.000000e+00> : vector<8x8xf32>
    %95 = vector.multi_reduction <add>, %94, %cst_21 [2] : vector<8x8x8xf32> to vector<8x8xf32>
    %96 = vector.shape_cast %95 : vector<8x8xf32> to vector<8x8x1xf32>
    %97 = tpu.reciprocal %96 {approx = true} : vector<8x8x1xf32> -> vector<8x8x1xf32>
    %98 = vector.broadcast %97 : vector<8x8x1xf32> to vector<8x8x8xf32>
    %99 = arith.mulf %94, %98 : vector<8x8x8xf32>
    "tpu.trace_start"() <{level = 10 : i32, message = "bqk,bkd->bqd"}> : () -> ()
    %cst_22 = arith.constant dense<0.000000e+00> : vector<8x8x8xf32>
    %100 = tpu.matmul %99, %87, %cst_22 {dimension_numbers = #tpu.dot_dimension_numbers<[2], [1], [1], [2], [0, 0, 0, 1, 1, 2], [0], [0]>} : vector<8x8x8xf32>, vector<8x8x8xf32>, vector<8x8x8xf32> -> vector<8x8x8xf32>
    "tpu.trace_stop"() : () -> ()
    "tpu.trace_start"() <{level = 10 : i32, message = "bqd,bde->bqe"}> : () -> ()
    %cst_23 = arith.constant dense<0.000000e+00> : vector<8x8x32xf32>
    %101 = tpu.matmul %100, %88, %cst_23 {dimension_numbers = #tpu.dot_dimension_numbers<[2], [1], [1], [2], [0, 0, 0, 1, 1, 2], [0], [0]>} : vector<8x8x8xf32>, vector<8x8x32xf32>, vector<8x8x32xf32> -> vector<8x8x32xf32>
    "tpu.trace_stop"() : () -> ()
    %102 = vector.extract_strided_slice %101 {offsets = [0, 0, 0], sizes = [4, 8, 32], strides = [1, 1, 1]} : vector<8x8x32xf32> to vector<4x8x32xf32>
    %cst_24 = arith.constant dense<0.000000e+00> : vector<8x32xf32>
    %103 = vector.multi_reduction <add>, %102, %cst_24 [0] : vector<4x8x32xf32> to vector<8x32xf32>
    %104 = vector.extract_strided_slice %101 {offsets = [4, 0, 0], sizes = [4, 8, 32], strides = [1, 1, 1]} : vector<8x8x32xf32> to vector<4x8x32xf32>
    %cst_25 = arith.constant dense<0.000000e+00> : vector<8x32xf32>
    %105 = vector.multi_reduction <add>, %104, %cst_25 [0] : vector<4x8x32xf32> to vector<8x32xf32>
    %106 = tpu.concatenate %103, %105 in 0 : vector<8x32xf32>, vector<8x32xf32> -> vector<16x32xf32>
    %107 = vector.broadcast %3 : vector<1x32xf32> to vector<16x32xf32>
    %108 = arith.addf %106, %107 : vector<16x32xf32>
    %109 = arith.addf %13, %108 : vector<16x32xf32>
    %cst_26 = arith.constant dense<0.000000e+00> : vector<16xf32>
    %110 = vector.multi_reduction <add>, %109, %cst_26 [1] : vector<16x32xf32> to vector<16xf32>
    %111 = vector.shape_cast %110 : vector<16xf32> to vector<16x1xf32>
    %cst_27 = arith.constant 3.200000e+01 : f32
    %112 = vector.broadcast %cst_27 : f32 to vector<16x1xf32>
    %113 = arith.divf %111, %112 : vector<16x1xf32>
    %114 = arith.mulf %109, %109 : vector<16x32xf32>
    %cst_28 = arith.constant dense<0.000000e+00> : vector<16xf32>
    %115 = vector.multi_reduction <add>, %114, %cst_28 [1] : vector<16x32xf32> to vector<16xf32>
    %116 = vector.shape_cast %115 : vector<16xf32> to vector<16x1xf32>
    %cst_29 = arith.constant 3.200000e+01 : f32
    %117 = vector.broadcast %cst_29 : f32 to vector<16x1xf32>
    %118 = arith.divf %116, %117 : vector<16x1xf32>
    %119 = arith.mulf %113, %113 : vector<16x1xf32>
    %120 = arith.subf %118, %119 : vector<16x1xf32>
    %121 = vector.broadcast %113 : vector<16x1xf32> to vector<16x32xf32>
    %122 = arith.subf %109, %121 : vector<16x32xf32>
    %cst_30 = arith.constant 9.99999974E-6 : f32
    %123 = vector.broadcast %cst_30 : f32 to vector<16x1xf32>
    %124 = arith.addf %120, %123 : vector<16x1xf32>
    %125 = math.rsqrt %124 : vector<16x1xf32>
    %126 = vector.broadcast %125 : vector<16x1xf32> to vector<16x32xf32>
    %127 = arith.mulf %122, %126 : vector<16x32xf32>
    %128 = vector.broadcast %5 : vector<1x32xf32> to vector<16x32xf32>
    %129 = arith.mulf %127, %128 : vector<16x32xf32>
    %130 = vector.broadcast %6 : vector<1x32xf32> to vector<16x32xf32>
    %131 = arith.addf %129, %130 : vector<16x32xf32>
    %132 = arith.addf %131, %14 : vector<16x32xf32>
    %133 = arith.addf %15, %16 : vector<32x32xf32>
    %c0_31 = arith.constant 0 : index
    %c0_32 = arith.constant 0 : index
    %134 = vector.load %arg6[%c0_31, %c0_32] : memref<32x96xf32, #tpu.memory_space<vmem>>, vector<32x32xf32>
    %cst_33 = arith.constant dense<0.000000e+00> : vector<16x32xf32>
    %135 = tpu.matmul %132, %134, %cst_33 {dimension_numbers = #tpu.dot_dimension_numbers<[1], [0], [0], [1], [0, 0, 1, 1], [], []>} : vector<16x32xf32>, vector<32x32xf32>, vector<16x32xf32> -> vector<16x32xf32>
    %136 = vector.extract_strided_slice %2 {offsets = [0, 0], sizes = [1, 32], strides = [1, 1]} : vector<1x96xf32> to vector<1x32xf32>
    %137 = vector.broadcast %136 : vector<1x32xf32> to vector<16x32xf32>
    %138 = arith.addf %135, %137 : vector<16x32xf32>
    %c0_34 = arith.constant 0 : index
    %c32 = arith.constant 32 : index
    %139 = vector.load %arg6[%c0_34, %c32] : memref<32x96xf32, #tpu.memory_space<vmem>>, vector<32x32xf32>
    %cst_35 = arith.constant dense<0.000000e+00> : vector<32x32xf32>
    %140 = tpu.matmul %133, %139, %cst_35 {dimension_numbers = #tpu.dot_dimension_numbers<[1], [0], [0], [1], [0, 0, 1, 1], [], []>} : vector<32x32xf32>, vector<32x32xf32>, vector<32x32xf32> -> vector<32x32xf32>
    %141 = vector.extract_strided_slice %2 {offsets = [0, 32], sizes = [1, 32], strides = [1, 1]} : vector<1x96xf32> to vector<1x32xf32>
    %142 = vector.broadcast %141 : vector<1x32xf32> to vector<32x32xf32>
    %143 = arith.addf %140, %142 : vector<32x32xf32>
    %c0_36 = arith.constant 0 : index
    %c64_37 = arith.constant 64 : index
    %144 = vector.load %arg6[%c0_36, %c64_37] : memref<32x96xf32, #tpu.memory_space<vmem>>, vector<32x32xf32>
    %cst_38 = arith.constant dense<0.000000e+00> : vector<32x32xf32>
    %145 = tpu.matmul %15, %144, %cst_38 {dimension_numbers = #tpu.dot_dimension_numbers<[1], [0], [0], [1], [0, 0, 1, 1], [], []>} : vector<32x32xf32>, vector<32x32xf32>, vector<32x32xf32> -> vector<32x32xf32>
    %146 = vector.extract_strided_slice %2 {offsets = [0, 64], sizes = [1, 32], strides = [1, 1]} : vector<1x96xf32> to vector<1x32xf32>
    %147 = vector.broadcast %146 : vector<1x32xf32> to vector<32x32xf32>
    %148 = arith.addf %145, %147 : vector<32x32xf32>
    %149 = vector.extract_strided_slice %138 {offsets = [0, 0], sizes = [8, 32], strides = [1, 1]} : vector<16x32xf32> to vector<8x32xf32>
    %150 = vector.extract_strided_slice %149 {offsets = [0, 0], sizes = [8, 8], strides = [1, 1]} : vector<8x32xf32> to vector<8x8xf32>
    %151 = vector.extract_strided_slice %149 {offsets = [0, 8], sizes = [8, 8], strides = [1, 1]} : vector<8x32xf32> to vector<8x8xf32>
    %152 = vector.extract_strided_slice %149 {offsets = [0, 16], sizes = [8, 8], strides = [1, 1]} : vector<8x32xf32> to vector<8x8xf32>
    %153 = vector.extract_strided_slice %149 {offsets = [0, 24], sizes = [8, 8], strides = [1, 1]} : vector<8x32xf32> to vector<8x8xf32>
    %154 = vector.extract_strided_slice %138 {offsets = [8, 0], sizes = [8, 32], strides = [1, 1]} : vector<16x32xf32> to vector<8x32xf32>
    %155 = vector.extract_strided_slice %154 {offsets = [0, 0], sizes = [8, 8], strides = [1, 1]} : vector<8x32xf32> to vector<8x8xf32>
    %156 = vector.extract_strided_slice %154 {offsets = [0, 8], sizes = [8, 8], strides = [1, 1]} : vector<8x32xf32> to vector<8x8xf32>
    %157 = vector.extract_strided_slice %154 {offsets = [0, 16], sizes = [8, 8], strides = [1, 1]} : vector<8x32xf32> to vector<8x8xf32>
    %158 = vector.extract_strided_slice %154 {offsets = [0, 24], sizes = [8, 8], strides = [1, 1]} : vector<8x32xf32> to vector<8x8xf32>
    %159 = vector.shape_cast %150 : vector<8x8xf32> to vector<1x8x8xf32>
    %160 = vector.shape_cast %151 : vector<8x8xf32> to vector<1x8x8xf32>
    %161 = vector.shape_cast %152 : vector<8x8xf32> to vector<1x8x8xf32>
    %162 = vector.shape_cast %153 : vector<8x8xf32> to vector<1x8x8xf32>
    %163 = vector.shape_cast %155 : vector<8x8xf32> to vector<1x8x8xf32>
    %164 = vector.shape_cast %156 : vector<8x8xf32> to vector<1x8x8xf32>
    %165 = vector.shape_cast %157 : vector<8x8xf32> to vector<1x8x8xf32>
    %166 = vector.shape_cast %158 : vector<8x8xf32> to vector<1x8x8xf32>
    %167 = tpu.concatenate %159, %160, %161, %162, %163, %164, %165, %166 in 0 : vector<1x8x8xf32>, vector<1x8x8xf32>, vector<1x8x8xf32>, vector<1x8x8xf32>, vector<1x8x8xf32>, vector<1x8x8xf32>, vector<1x8x8xf32>, vector<1x8x8xf32> -> vector<8x8x8xf32>
    %168 = vector.extract_strided_slice %143 {offsets = [0, 0], sizes = [16, 32], strides = [1, 1]} : vector<32x32xf32> to vector<16x32xf32>
    %169 = vector.extract_strided_slice %168 {offsets = [0, 0], sizes = [16, 8], strides = [1, 1]} : vector<16x32xf32> to vector<16x8xf32>
    %170 = vector.extract_strided_slice %168 {offsets = [0, 8], sizes = [16, 8], strides = [1, 1]} : vector<16x32xf32> to vector<16x8xf32>
    %171 = vector.extract_strided_slice %168 {offsets = [0, 16], sizes = [16, 8], strides = [1, 1]} : vector<16x32xf32> to vector<16x8xf32>
    %172 = vector.extract_strided_slice %168 {offsets = [0, 24], sizes = [16, 8], strides = [1, 1]} : vector<16x32xf32> to vector<16x8xf32>
    %173 = vector.extract_strided_slice %143 {offsets = [16, 0], sizes = [16, 32], strides = [1, 1]} : vector<32x32xf32> to vector<16x32xf32>
    %174 = vector.extract_strided_slice %173 {offsets = [0, 0], sizes = [16, 8], strides = [1, 1]} : vector<16x32xf32> to vector<16x8xf32>
    %175 = vector.extract_strided_slice %173 {offsets = [0, 8], sizes = [16, 8], strides = [1, 1]} : vector<16x32xf32> to vector<16x8xf32>
    %176 = vector.extract_strided_slice %173 {offsets = [0, 16], sizes = [16, 8], strides = [1, 1]} : vector<16x32xf32> to vector<16x8xf32>
    %177 = vector.extract_strided_slice %173 {offsets = [0, 24], sizes = [16, 8], strides = [1, 1]} : vector<16x32xf32> to vector<16x8xf32>
    %178 = vector.shape_cast %169 : vector<16x8xf32> to vector<1x16x8xf32>
    %179 = vector.shape_cast %170 : vector<16x8xf32> to vector<1x16x8xf32>
    %180 = vector.shape_cast %171 : vector<16x8xf32> to vector<1x16x8xf32>
    %181 = vector.shape_cast %172 : vector<16x8xf32> to vector<1x16x8xf32>
    %182 = vector.shape_cast %174 : vector<16x8xf32> to vector<1x16x8xf32>
    %183 = vector.shape_cast %175 : vector<16x8xf32> to vector<1x16x8xf32>
    %184 = vector.shape_cast %176 : vector<16x8xf32> to vector<1x16x8xf32>
    %185 = vector.shape_cast %177 : vector<16x8xf32> to vector<1x16x8xf32>
    %186 = tpu.concatenate %178, %179, %180, %181, %182, %183, %184, %185 in 0 : vector<1x16x8xf32>, vector<1x16x8xf32>, vector<1x16x8xf32>, vector<1x16x8xf32>, vector<1x16x8xf32>, vector<1x16x8xf32>, vector<1x16x8xf32>, vector<1x16x8xf32> -> vector<8x16x8xf32>
    %187 = vector.extract_strided_slice %148 {offsets = [0, 0], sizes = [16, 32], strides = [1, 1]} : vector<32x32xf32> to vector<16x32xf32>
    %188 = vector.extract_strided_slice %187 {offsets = [0, 0], sizes = [16, 8], strides = [1, 1]} : vector<16x32xf32> to vector<16x8xf32>
    %189 = vector.extract_strided_slice %187 {offsets = [0, 8], sizes = [16, 8], strides = [1, 1]} : vector<16x32xf32> to vector<16x8xf32>
    %190 = vector.extract_strided_slice %187 {offsets = [0, 16], sizes = [16, 8], strides = [1, 1]} : vector<16x32xf32> to vector<16x8xf32>
    %191 = vector.extract_strided_slice %187 {offsets = [0, 24], sizes = [16, 8], strides = [1, 1]} : vector<16x32xf32> to vector<16x8xf32>
    %192 = vector.extract_strided_slice %148 {offsets = [16, 0], sizes = [16, 32], strides = [1, 1]} : vector<32x32xf32> to vector<16x32xf32>
    %193 = vector.extract_strided_slice %192 {offsets = [0, 0], sizes = [16, 8], strides = [1, 1]} : vector<16x32xf32> to vector<16x8xf32>
    %194 = vector.extract_strided_slice %192 {offsets = [0, 8], sizes = [16, 8], strides = [1, 1]} : vector<16x32xf32> to vector<16x8xf32>
    %195 = vector.extract_strided_slice %192 {offsets = [0, 16], sizes = [16, 8], strides = [1, 1]} : vector<16x32xf32> to vector<16x8xf32>
    %196 = vector.extract_strided_slice %192 {offsets = [0, 24], sizes = [16, 8], strides = [1, 1]} : vector<16x32xf32> to vector<16x8xf32>
    %197 = vector.shape_cast %188 : vector<16x8xf32> to vector<1x16x8xf32>
    %198 = vector.shape_cast %189 : vector<16x8xf32> to vector<1x16x8xf32>
    %199 = vector.shape_cast %190 : vector<16x8xf32> to vector<1x16x8xf32>
    %200 = vector.shape_cast %191 : vector<16x8xf32> to vector<1x16x8xf32>
    %201 = vector.shape_cast %193 : vector<16x8xf32> to vector<1x16x8xf32>
    %202 = vector.shape_cast %194 : vector<16x8xf32> to vector<1x16x8xf32>
    %203 = vector.shape_cast %195 : vector<16x8xf32> to vector<1x16x8xf32>
    %204 = vector.shape_cast %196 : vector<16x8xf32> to vector<1x16x8xf32>
    %205 = tpu.concatenate %197, %198, %199, %200, %201, %202, %203, %204 in 0 : vector<1x16x8xf32>, vector<1x16x8xf32>, vector<1x16x8xf32>, vector<1x16x8xf32>, vector<1x16x8xf32>, vector<1x16x8xf32>, vector<1x16x8xf32>, vector<1x16x8xf32> -> vector<8x16x8xf32>
    %c0_39 = arith.constant 0 : index
    %c0_40 = arith.constant 0 : index
    %c0_41 = arith.constant 0 : index
    %206 = vector.load %arg8[%c0_39, %c0_40, %c0_41] : memref<8x8x32xf32, #tpu.memory_space<vmem>>, vector<8x8x32xf32>
    "tpu.trace_start"() <{level = 10 : i32, message = "bqd,bkd->bqk"}> : () -> ()
    %cst_42 = arith.constant dense<0.000000e+00> : vector<8x8x16xf32>
    %207 = tpu.matmul %167, %186, %cst_42 {dimension_numbers = #tpu.dot_dimension_numbers<[2], [2], [1], [1], [0, 0, 0, 1, 1, 1], [0], [0]>} : vector<8x8x8xf32>, vector<8x16x8xf32>, vector<8x8x16xf32> -> vector<8x8x16xf32>
    "tpu.trace_stop"() : () -> ()
    %208 = vector.broadcast %17 : vector<8x1x16xf32> to vector<8x8x16xf32>
    %209 = arith.addf %207, %208 : vector<8x8x16xf32>
    %cst_43 = arith.constant dense<0xFF800000> : vector<8x8xf32>
    %210 = vector.multi_reduction <maximumf>, %209, %cst_43 [2] : vector<8x8x16xf32> to vector<8x8xf32>
    %211 = vector.shape_cast %210 : vector<8x8xf32> to vector<8x8x1xf32>
    %212 = vector.broadcast %211 : vector<8x8x1xf32> to vector<8x8x16xf32>
    %213 = arith.subf %209, %212 : vector<8x8x16xf32>
    %214 = math.exp %213 : vector<8x8x16xf32>
    %cst_44 = arith.constant dense<0.000000e+00> : vector<8x8xf32>
    %215 = vector.multi_reduction <add>, %214, %cst_44 [2] : vector<8x8x16xf32> to vector<8x8xf32>
    %216 = vector.shape_cast %215 : vector<8x8xf32> to vector<8x8x1xf32>
    %217 = tpu.reciprocal %216 {approx = true} : vector<8x8x1xf32> -> vector<8x8x1xf32>
    %218 = vector.broadcast %217 : vector<8x8x1xf32> to vector<8x8x16xf32>
    %219 = arith.mulf %214, %218 : vector<8x8x16xf32>
    "tpu.trace_start"() <{level = 10 : i32, message = "bqk,bkd->bqd"}> : () -> ()
    %cst_45 = arith.constant dense<0.000000e+00> : vector<8x8x8xf32>
    %220 = tpu.matmul %219, %205, %cst_45 {dimension_numbers = #tpu.dot_dimension_numbers<[2], [1], [1], [2], [0, 0, 0, 1, 1, 2], [0], [0]>} : vector<8x8x16xf32>, vector<8x16x8xf32>, vector<8x8x8xf32> -> vector<8x8x8xf32>
    "tpu.trace_stop"() : () -> ()
    "tpu.trace_start"() <{level = 10 : i32, message = "bqd,bde->bqe"}> : () -> ()
    %cst_46 = arith.constant dense<0.000000e+00> : vector<8x8x32xf32>
    %221 = tpu.matmul %220, %206, %cst_46 {dimension_numbers = #tpu.dot_dimension_numbers<[2], [1], [1], [2], [0, 0, 0, 1, 1, 2], [0], [0]>} : vector<8x8x8xf32>, vector<8x8x32xf32>, vector<8x8x32xf32> -> vector<8x8x32xf32>
    "tpu.trace_stop"() : () -> ()
    %222 = vector.extract_strided_slice %221 {offsets = [0, 0, 0], sizes = [4, 8, 32], strides = [1, 1, 1]} : vector<8x8x32xf32> to vector<4x8x32xf32>
    %cst_47 = arith.constant dense<0.000000e+00> : vector<8x32xf32>
    %223 = vector.multi_reduction <add>, %222, %cst_47 [0] : vector<4x8x32xf32> to vector<8x32xf32>
    %224 = vector.extract_strided_slice %221 {offsets = [4, 0, 0], sizes = [4, 8, 32], strides = [1, 1, 1]} : vector<8x8x32xf32> to vector<4x8x32xf32>
    %cst_48 = arith.constant dense<0.000000e+00> : vector<8x32xf32>
    %225 = vector.multi_reduction <add>, %224, %cst_48 [0] : vector<4x8x32xf32> to vector<8x32xf32>
    %226 = tpu.concatenate %223, %225 in 0 : vector<8x32xf32>, vector<8x32xf32> -> vector<16x32xf32>
    %227 = vector.broadcast %4 : vector<1x32xf32> to vector<16x32xf32>
    %228 = arith.addf %226, %227 : vector<16x32xf32>
    %229 = arith.addf %131, %228 : vector<16x32xf32>
    %cst_49 = arith.constant dense<0.000000e+00> : vector<16xf32>
    %230 = vector.multi_reduction <add>, %229, %cst_49 [1] : vector<16x32xf32> to vector<16xf32>
    %231 = vector.shape_cast %230 : vector<16xf32> to vector<16x1xf32>
    %cst_50 = arith.constant 3.200000e+01 : f32
    %232 = vector.broadcast %cst_50 : f32 to vector<16x1xf32>
    %233 = arith.divf %231, %232 : vector<16x1xf32>
    %234 = arith.mulf %229, %229 : vector<16x32xf32>
    %cst_51 = arith.constant dense<0.000000e+00> : vector<16xf32>
    %235 = vector.multi_reduction <add>, %234, %cst_51 [1] : vector<16x32xf32> to vector<16xf32>
    %236 = vector.shape_cast %235 : vector<16xf32> to vector<16x1xf32>
    %cst_52 = arith.constant 3.200000e+01 : f32
    %237 = vector.broadcast %cst_52 : f32 to vector<16x1xf32>
    %238 = arith.divf %236, %237 : vector<16x1xf32>
    %239 = arith.mulf %233, %233 : vector<16x1xf32>
    %240 = arith.subf %238, %239 : vector<16x1xf32>
    %241 = vector.broadcast %233 : vector<16x1xf32> to vector<16x32xf32>
    %242 = arith.subf %229, %241 : vector<16x32xf32>
    %cst_53 = arith.constant 9.99999974E-6 : f32
    %243 = vector.broadcast %cst_53 : f32 to vector<16x1xf32>
    %244 = arith.addf %240, %243 : vector<16x1xf32>
    %245 = math.rsqrt %244 : vector<16x1xf32>
    %246 = vector.broadcast %245 : vector<16x1xf32> to vector<16x32xf32>
    %247 = arith.mulf %242, %246 : vector<16x32xf32>
    %248 = vector.broadcast %7 : vector<1x32xf32> to vector<16x32xf32>
    %249 = arith.mulf %247, %248 : vector<16x32xf32>
    %250 = vector.broadcast %8 : vector<1x32xf32> to vector<16x32xf32>
    %251 = arith.addf %249, %250 : vector<16x32xf32>
    %c0_54 = arith.constant 0 : index
    %c0_55 = arith.constant 0 : index
    %252 = vector.load %arg9[%c0_54, %c0_55] : memref<32x64xf32, #tpu.memory_space<vmem>>, vector<32x64xf32>
    %cst_56 = arith.constant dense<0.000000e+00> : vector<16x64xf32>
    %253 = tpu.matmul %251, %252, %cst_56 {dimension_numbers = #tpu.dot_dimension_numbers<[1], [0], [0], [1], [0, 0, 1, 1], [], []>} : vector<16x32xf32>, vector<32x64xf32>, vector<16x64xf32> -> vector<16x64xf32>
    %254 = vector.broadcast %11 : vector<1x64xf32> to vector<16x64xf32>
    %255 = arith.addf %253, %254 : vector<16x64xf32>
    %cst_57 = arith.constant 0.000000e+00 : f32
    %256 = vector.broadcast %cst_57 : f32 to vector<16x64xf32>
    %257 = arith.maximumf %255, %256 : vector<16x64xf32>
    %c0_58 = arith.constant 0 : index
    %c0_59 = arith.constant 0 : index
    %258 = vector.load %arg10[%c0_58, %c0_59] : memref<64x32xf32, #tpu.memory_space<vmem>>, vector<64x32xf32>
    %cst_60 = arith.constant dense<0.000000e+00> : vector<16x32xf32>
    %259 = tpu.matmul %257, %258, %cst_60 {dimension_numbers = #tpu.dot_dimension_numbers<[1], [0], [0], [1], [0, 0, 1, 1], [], []>} : vector<16x64xf32>, vector<64x32xf32>, vector<16x32xf32> -> vector<16x32xf32>
    %260 = vector.broadcast %12 : vector<1x32xf32> to vector<16x32xf32>
    %261 = arith.addf %259, %260 : vector<16x32xf32>
    %262 = arith.addf %251, %261 : vector<16x32xf32>
    %cst_61 = arith.constant dense<0.000000e+00> : vector<16xf32>
    %263 = vector.multi_reduction <add>, %262, %cst_61 [1] : vector<16x32xf32> to vector<16xf32>
    %264 = vector.shape_cast %263 : vector<16xf32> to vector<16x1xf32>
    %cst_62 = arith.constant 3.200000e+01 : f32
    %265 = vector.broadcast %cst_62 : f32 to vector<16x1xf32>
    %266 = arith.divf %264, %265 : vector<16x1xf32>
    %267 = arith.mulf %262, %262 : vector<16x32xf32>
    %cst_63 = arith.constant dense<0.000000e+00> : vector<16xf32>
    %268 = vector.multi_reduction <add>, %267, %cst_63 [1] : vector<16x32xf32> to vector<16xf32>
    %269 = vector.shape_cast %268 : vector<16xf32> to vector<16x1xf32>
    %cst_64 = arith.constant 3.200000e+01 : f32
    %270 = vector.broadcast %cst_64 : f32 to vector<16x1xf32>
    %271 = arith.divf %269, %270 : vector<16x1xf32>
    %272 = arith.mulf %266, %266 : vector<16x1xf32>
    %273 = arith.subf %271, %272 : vector<16x1xf32>
    %274 = vector.broadcast %266 : vector<16x1xf32> to vector<16x32xf32>
    %275 = arith.subf %262, %274 : vector<16x32xf32>
    %cst_65 = arith.constant 9.99999974E-6 : f32
    %276 = vector.broadcast %cst_65 : f32 to vector<16x1xf32>
    %277 = arith.addf %273, %276 : vector<16x1xf32>
    %278 = math.rsqrt %277 : vector<16x1xf32>
    %279 = vector.broadcast %278 : vector<16x1xf32> to vector<16x32xf32>
    %280 = arith.mulf %275, %279 : vector<16x32xf32>
    %281 = vector.broadcast %9 : vector<1x32xf32> to vector<16x32xf32>
    %282 = arith.mulf %280, %281 : vector<16x32xf32>
    %283 = vector.broadcast %10 : vector<1x32xf32> to vector<16x32xf32>
    %284 = arith.addf %282, %283 : vector<16x32xf32>
    %c0_66 = arith.constant 0 : index
    %c0_67 = arith.constant 0 : index
    %285 = vector.load %arg12[%c0_66, %c0_67] : memref<16x32xf32, #tpu.memory_space<vmem>>, vector<16x32xf32>
    tpu.vector_store %arg12[%c0_66, %c0_67], %284 {strides = array<i32>} : memref<16x32xf32, #tpu.memory_space<vmem>>, vector<16x32xf32>,
    return
  }
}

</mosaic_0001>

<bundles_post_ra>
// kernel: global_decoder_layer.1
= control target key start
LH: loop header
LB: loop body
LE: loop exit
PB: predicated region body
PF: predicated region fallthrough
CT: control target
= control target key end

     0   :  { %vm73_vm0 = vcmask 261120   ;;  %v69_v13 = vlaneseq  ;;  %s5773_s19 = smov 120   ;;  %v5774_v21 = vmov 0.0   ;;  %s5775_s20 = smov 112   ;;  %vm5776_vm1 = vmmov 0   ;;  %s6565_s5 = inlined_call_operand.vmem [shape: f32[32,96], index: 5, kind: input, shape index: {}]   ;;  %s6566_s0 = inlined_call_operand.vmem [shape: f32[16,32], index: 0, kind: input, shape index: {}]   ;;  %s6567_s1 = inlined_call_operand.vmem [shape: f32[16,32], index: 1, kind: input, shape index: {}]   ;;  %s6568_s11 = inlined_call_operand.vmem [shape: f32[12,96], index: 11, kind: input, shape index: {}]   ;;  %s6569_s7 = inlined_call_operand.vmem [shape: f32[8,8,32], index: 7, kind: input, shape index: {}]   ;;  %s6570_s6 = inlined_call_operand.vmem [shape: f32[32,96], index: 6, kind: input, shape index: {}]   ;;  %s6571_s2 = inlined_call_operand.vmem [shape: f32[32,32], index: 2, kind: input, shape index: {}]   ;;  %s6572_s3 = inlined_call_operand.vmem [shape: f32[32,32], index: 3, kind: input, shape index: {}]   ;;  %s6573_s4 = inlined_call_operand.vmem [shape: f32[8,1,16], index: 4, kind: input, shape index: {}]   ;;  %s6574_s8 = inlined_call_operand.vmem [shape: f32[8,8,32], index: 8, kind: input, shape index: {}]   ;;  %s6575_s9 = inlined_call_operand.vmem [shape: f32[32,64], index: 9, kind: input, shape index: {}]   ;;  %s6576_s10 = inlined_call_operand.vmem [shape: f32[64,32], index: 10, kind: input, shape index: {}]   ;;  %s6577_s12 = inlined_call_operand.vmem [shape: f32[16,32], index: 12, kind: output, shape index: {}]  }
   0x1   :  { %v65_v0 = vld [vmem:[%s6565_s5] sm:$0xff]  ;;  %v66_v1 = vld [vmem:[%s6565_s5 + $0x8] sm:$0xff]  ;;  %v67_v2 = vld [vmem:[%s6565_s5 + $0x10] sm:$0xff]  ;;  %s5777_s21 = smov 64   ;;  %s5778_s22 = smov 96   ;;  %vm300_vm2 = vcmask 64512  }
   0x2   :  { %v5605_v3 = vpack.i.bf16 %v66_v1, %v65_v0  ;;  %v5477_v4 = vpack.c.bf16 %v66_v1, %v65_v0  ;;  %v68_v5 = vld [vmem:[%s6565_s5 + $0x18] sm:$0xff]  ;;  %v5860_v6 = vld [vmem:[%s6566_s0] sm:$0xff]  ;;  %v5874_v10 = vld [vmem:[%s6566_s0 + $0x8] sm:$0xff]  ;;  %v5885_v14 = vshrl.u32 %v69_v13, 7  ;;  %vm3298_vm4 = vcmask 130048  }
   0x3   :  { %v5481_v7 = vpack.c.bf16 %v68_v5, %v67_v2  ;;  %v5865_v8 = vld [vmem:[%s6567_s1] sm:$0xff]  ;;  %5133 = vmatprep.mubr.msk.f32.mxu1 %vm73_vm0, %v5860_v6  ;;  %v5879_v11 = vld [vmem:[%s6567_s1 + $0x8] sm:$0xff]  ;;  %s5772_s1 = smov 104   ;;  %v5610_v23 = vpack.i.bf16 %v68_v5, %v67_v2  ;;  %vm6210_vm3 = vmpackc.low %vm300_vm2, %vm300_vm2  ;;  %vm4722_vm5 = vcmask 523264  }
   0x4   :  { %5478 = vmatprep.subr.bf16.mxu0 %v5477_v4  ;;  %v63_v9 = vadd.f32 %v5865_v8, %v5860_v6  ;;  %v64_v12 = vadd.f32 %v5879_v11, %v5874_v10  ;;  %v71_v15 = vsub.s32 0, %v5885_v14  ;;  %v5891_v16 = vld [vmem:[%s6568_s11] sm:$0xff] }
   0x5   :  { %5480 = vmatpush3.bf16.msra.mxu0 %v5477_v4 }
   0x6   :  { %5482 = vmatprep.subr.bf16.mxu0 %v5481_v7  ;;  %5122 = vmatprep.mubr.msk.f32.mxu0 %vm73_vm0, %v63_v9  ;;  %v5896_v17 = vrot.slane %v5891_v16, %v71_v15 }
   0x9   :  { %5484 = vmatpush3.bf16.msra.mxu0 %v5481_v7 }
   0xa   :  { %5136 = vmatprep.subr.mxu0 %v5774_v21 }
   0xc   :  { %5123 = vmatmul.mubr.msk.f32.vlgmr.msra.gmra.mrb[0].mxu0 %vm73_vm0, %v64_v12 }
   0xd   :  { %5138 = vmatprep.mubr.msk.f32.mxu0 %vm5776_vm1, %v5774_v21 }
  0xdf   :  { %v5124_v18 = vpop.f32.mrb[0].mxu0 }
  0xe0   :  { %v146_v19 = vpop.f32.mrb[1].mxu0  ;;  %v5903_v22 = vadd.f32 %v5124_v18, %v5896_v17 }
  0xe1   :  { %v147_v20 = vadd.f32 %v146_v19, %v5896_v17 }
  0xe3   :  { %261 = vrot.lane.b32.xlu1 %v147_v20, %s5772_s1  ;;  %257 = vrot.lane.b32.xlu0 %v147_v20, %s5773_s19 }
  0xe7   :  { %264 = vrot.lane.b32.xlu1 %v5903_v22, %s5773_s19  ;;  %259 = vrot.lane.b32.xlu0 %v147_v20, %s5775_s20 }
  0xeb   :  { %268 = vrot.lane.b32.xlu1 %v5903_v22, %s5772_s1  ;;  %266 = vrot.lane.b32.xlu0 %v5903_v22, %s5775_s20 }
  0xef   :  { %5606 = vrot.lane.b32.xlu0 %v5605_v3, %s5777_s21  ;;  %5611 = vrot.lane.b32.xlu1 %v5610_v23, %s5777_s21 }
  0xf3   :  { %298 = vrot.lane.b32.xlu0 %v147_v20, %s5778_s22 }
 0x155   :  { %v262_v24 = vpop.permute.xlu1 %261  ;;  %v258_v25 = vpop.permute.xlu0 %257 }
 0x156   :  { %375 = vrot.lane.b32.xlu1 %v258_v25, %s5778_s22 }
 0x159   :  { %v265_v26 = vpop.permute.xlu1 %264  ;;  %v260_v27 = vpop.permute.xlu0 %259 }
 0x15a   :  { %527 = vrot.lane.b32.xlu1 %v262_v24, %s5778_s22  ;;  %451 = vrot.lane.b32.xlu0 %v260_v27, %s5778_s22 }
 0x15d   :  { %v269_v28 = vpop.permute.xlu1 %268  ;;  %v267_v29 = vpop.permute.xlu0 %266 }
 0x15e   :  { %679 = vrot.lane.b32.xlu1 %v265_v26, %s5778_s22  ;;  %603 = vrot.lane.b32.xlu0 %v5903_v22, %s5778_s22 }
 0x161   :  { %v5607_v30 = vpop.permute.xlu0 %5606  ;;  %v5612_v31 = vpop.permute.xlu1 %5611 }
 0x162   :  { %v5609_v32 = vunpack.i.h.bf16 %v5607_v30  ;;  %v5608_v33 = vunpack.i.l.bf16 %v5607_v30  ;;  %831 = vrot.lane.b32.xlu1 %v269_v28, %s5778_s22  ;;  %755 = vrot.lane.b32.xlu0 %v267_v29, %s5778_s22  ;;  %v5614_v34 = vunpack.i.h.bf16 %v5612_v31  ;;  %v5613_v35 = vunpack.i.l.bf16 %v5612_v31 }
 0x164   :  { %v5489_v36 = vpack.c.bf16 %v5614_v34, %v5613_v35  ;;  %v5485_v37 = vpack.c.bf16 %v5609_v32, %v5608_v33 }
 0x165   :  { %v299_v38 = vpop.permute.xlu0 %298 }
 0x166   :  { %5137 = vmatpush3.xpose.msk.msra.mxu0 %vm300_vm2, %v299_v38  ;;  %5486 = vmatprep.subr.bf16.mxu1 %v5485_v37 }
 0x167   :  { %5488 = vmatpush3.bf16.msra.mxu1 %v5485_v37  ;;  %5141 = vmatprep.subr.mxu0 %v5774_v21 }
 0x168   :  { %5490 = vmatprep.subr.bf16.mxu1 %v5489_v36 }
 0x169   :  { %5139 = vmatmul.mubr.msk.f32.vlgmr.msra.gmra.mrb[2].mxu0 %vm300_vm2, %v147_v20 }
 0x16a   :  { %5143 = vmatprep.mubr.msk.f32.mxu0 %vm5776_vm1, %v5774_v21 }
 0x16b   :  { %5492 = vmatpush3.bf16.msra.mxu1 %v5489_v36 }
 0x16c   :  { %5151 = vmatprep.subr.mxu1 %v5774_v21 }
 0x16e   :  { %5134 = vmatmul.mubr.msk.f32.vlgmr.msra.gmra.mrb[0].mxu1 %vm73_vm0, %v5874_v10 }
 0x16f   :  { %5153 = vmatprep.mubr.msk.f32.mxu1 %vm5776_vm1, %v5774_v21 }
 0x1c8   :  { %v376_v39 = vpop.permute.xlu1 %375 }
 0x1c9   :  { %5142 = vmatpush3.xpose.msk.msra.mxu0 %vm300_vm2, %v376_v39 }
 0x1ca   :  { %5146 = vmatprep.subr.mxu0 %v5774_v21 }
 0x1cc   :  { %v528_v40 = vpop.permute.xlu1 %527  ;;  %5144 = vmatmul.mubr.msk.f32.vlgmr.msra.gmra.mrb[4].mxu0 %vm300_vm2, %v258_v25  ;;  %v452_v41 = vpop.permute.xlu0 %451 }
 0x1cd   :  { %5147 = vmatpush3.xpose.msk.msra.mxu0 %vm300_vm2, %v452_v41  ;;  %5152 = vmatpush3.xpose.msk.msra.mxu1 %vm300_vm2, %v528_v40 }
 0x1ce   :  { %5148 = vmatprep.mubr.msk.f32.mxu0 %vm5776_vm1, %v5774_v21  ;;  %5156 = vmatprep.subr.mxu0 %v5774_v21 }
 0x1cf   :  { %5161 = vmatprep.subr.mxu1 %v5774_v21 }
 0x1d0   :  { %v680_v42 = vpop.permute.xlu1 %679  ;;  %5149 = vmatmul.mubr.msk.f32.vlgmr.msra.gmra.mrb[6].mxu0 %vm300_vm2, %v260_v27  ;;  %v604_v43 = vpop.permute.xlu0 %603  ;;  %5154 = vmatmul.mubr.msk.f32.vlgmr.msra.gmra.mrb[2].mxu1 %vm300_vm2, %v262_v24 }
 0x1d1   :  { %5157 = vmatpush3.xpose.msk.msra.mxu0 %vm300_vm2, %v604_v43  ;;  %5162 = vmatpush3.xpose.msk.msra.mxu1 %vm300_vm2, %v680_v42 }
 0x1d2   :  { %5158 = vmatprep.mubr.msk.f32.mxu0 %vm5776_vm1, %v5774_v21  ;;  %5163 = vmatprep.mubr.msk.f32.mxu1 %vm5776_vm1, %v5774_v21 }
 0x1d3   :  { %5166 = vmatprep.subr.mxu0 %v5774_v21  ;;  %5171 = vmatprep.subr.mxu1 %v5774_v21 }
 0x1d4   :  { %v832_v44 = vpop.permute.xlu1 %831  ;;  %5159 = vmatmul.mubr.msk.f32.vlgmr.msra.gmra.mrb[8].mxu0 %vm300_vm2, %v5903_v22  ;;  %v756_v45 = vpop.permute.xlu0 %755  ;;  %5164 = vmatmul.mubr.msk.f32.vlgmr.msra.gmra.mrb[4].mxu1 %vm300_vm2, %v265_v26 }
 0x1d5   :  { %5167 = vmatpush3.xpose.msk.msra.mxu0 %vm300_vm2, %v756_v45  ;;  %5172 = vmatpush3.xpose.msk.msra.mxu1 %vm300_vm2, %v832_v44 }
 0x1d6   :  { %5168 = vmatprep.mubr.msk.f32.mxu0 %vm5776_vm1, %v5774_v21  ;;  %5173 = vmatprep.mubr.msk.f32.mxu1 %vm5776_vm1, %v5774_v21 }
 0x1d7   :  { %5176 = vmatprep.subr.mxu0 %v5774_v21  ;;  %5181 = vmatprep.subr.mxu1 %v5774_v21 }
 0x1d8   :  { %5169 = vmatmul.mubr.msk.f32.vlgmr.msra.gmra.mrb[10].mxu0 %vm300_vm2, %v267_v29  ;;  %5174 = vmatmul.mubr.msk.f32.vlgmr.msra.gmra.mrb[6].mxu1 %vm300_vm2, %v269_v28 }
 0x1d9   :  { %5178 = vmatprep.mubr.msk.f32.mxu0 %vm5776_vm1, %v5774_v21  ;;  %5183 = vmatprep.mubr.msk.f32.mxu1 %vm5776_vm1, %v5774_v21 }
 0x23c   :  { %v371_v46 = vpop.f32.mrb[2].mxu0 }
 0x23d   :  { %v5140_v47 = vpop.f32.mrb[3].mxu0  ;;  %v907_v48 = vsel %vm300_vm2, %v371_v46, -inf }
 0x23e   :  { %908 = vmax.xlane.f32.xlu0 %v907_v48 }
 0x241   :  { %v5972_v49 = vpop.f32.mrb[0].mxu1 }
 0x242   :  { %v247_v50 = vpop.f32.mrb[1].mxu1 }
 0x29f   :  { %v447_v51 = vpop.f32.mrb[4].mxu0 }
 0x2a0   :  { %v5145_v52 = vpop.f32.mrb[5].mxu0  ;;  %v910_v53 = vsel %vm300_vm2, %v447_v51, -inf }
 0x2a1   :  { %911 = vmax.xlane.f32.xlu1 %v910_v53 }
 0x2a3   :  { %v523_v54 = vpop.f32.mrb[6].mxu0  ;;  %v599_v55 = vpop.f32.mrb[2].mxu1 }
 0x2a4   :  { %v5150_v56 = vpop.f32.mrb[7].mxu0  ;;  %v5155_v57 = vpop.f32.mrb[3].mxu1  ;;  %v916_v58 = vsel %vm300_vm2, %v599_v55, -inf  ;;  %v913_v0 = vsel %vm300_vm2, %v523_v54, -inf }
 0x2a5   :  { %917 = vmax.xlane.f32.xlu0 %v916_v58 }
 0x2a7   :  { %v675_v59 = vpop.f32.mrb[8].mxu0  ;;  %v751_v60 = vpop.f32.mrb[4].mxu1 }
 0x2a8   :  { %v5160_v61 = vpop.f32.mrb[9].mxu0  ;;  %v5165_v62 = vpop.f32.mrb[5].mxu1  ;;  %v919_v63 = vsel %vm300_vm2, %v675_v59, -inf  ;;  %v922_v7 = vsel %vm300_vm2, %v751_v60, -inf }
 0x2a9   :  { %920 = vmax.xlane.f32.xlu1 %v919_v63  ;;  %914 = vmax.xlane.f32.xlu0 %v913_v0 }
 0x2ab   :  { %v5978_v1 = vpop.f32.mrb[10].mxu0  ;;  %v5980_v2 = vpop.f32.mrb[6].mxu1 }
 0x2ac   :  { %v5170_v3 = vpop.f32.mrb[11].mxu0  ;;  %v5175_v4 = vpop.f32.mrb[7].mxu1  ;;  %v925_v5 = vsel %vm300_vm2, %v5978_v1, -inf  ;;  %v928_v9 = vsel %vm300_vm2, %v5980_v2, -inf }
 0x2ad   :  { %926 = vmax.xlane.f32.xlu1 %v925_v5  ;;  %923 = vmax.xlane.f32.xlu0 %v922_v7 }
 0x2b1   :  { %929 = vmax.xlane.f32.xlu0 %v928_v9 }
 0x2be   :  { %172 = vrot.lane.b32.xlu1 %v5896_v17, %s5777_s21 }
 0x2cb   :  { %v909_v26 = vpop.xlane.xlu0 %908 }
 0x2cc   :  { %v931_v27 = vsub.f32 %v371_v46, %v909_v26 }
 0x2ce   :  { %v939_v29 = vmul.f32 1.442695, %v931_v27 }
 0x32e   :  { %v912_v12 = vpop.xlane.xlu1 %911 }
 0x32f   :  { %v932_v30 = vsub.f32 %v447_v51, %v912_v12 }
 0x331   :  { %v941_v32 = vmul.f32 1.442695, %v932_v30 }
 0x332   :  { %v918_v28 = vpop.xlane.xlu0 %917 }
 0x333   :  { %v934_v33 = vsub.f32 %v599_v55, %v918_v28 }
 0x335   :  { %v945_v34 = vmul.f32 1.442695, %v934_v33  ;;  %v290_v33 = vld [vmem:[%s6569_s7] sm:$0xff] }
 0x336   :  { %v921_v13 = vpop.xlane.xlu1 %920  ;;  %v915_v31 = vpop.xlane.xlu0 %914 }
 0x337   :  { %v935_v18 = vsub.f32 %v675_v59, %v921_v13  ;;  %v933_v35 = vsub.f32 %v523_v54, %v915_v31 }
 0x339   :  { %v947_v19 = vmul.f32 1.442695, %v935_v18  ;;  %v943_v37 = vmul.f32 1.442695, %v933_v35  ;;  %v292_v35 = vld [vmem:[%s6569_s7 + $0x10] sm:$0xff] }
 0x33a   :  { %v927_v20 = vpop.xlane.xlu1 %926  ;;  %v924_v36 = vpop.xlane.xlu0 %923 }
 0x33b   :  { %5695 = vpow2.f32 %v947_v19  ;;  %v937_v22 = vsub.f32 %v5978_v1, %v927_v20  ;;  %v936_v38 = vsub.f32 %v751_v60, %v924_v36 }
 0x33c   :  { %5697 = vpow2.f32 %v939_v29 }
 0x33d   :  { %5699 = vpow2.f32 %v941_v32  ;;  %v949_v40 = vmul.f32 1.442695, %v936_v38  ;;  %v951_v55 = vmul.f32 1.442695, %v937_v22  ;;  %v293_v38 = vld [vmem:[%s6569_s7 + $0x18] sm:$0xff] }
 0x33e   :  { %v173_v23 = vpop.permute.xlu1 %172  ;;  %5701 = vpow2.f32 %v945_v34  ;;  %v930_v52 = vpop.xlane.xlu0 %929  ;;  %v291_v34 = vld [vmem:[%s6569_s7 + $0x8] sm:$0xff] }
 0x33f   :  { %v248_v24 = vadd.f32 %v247_v50, %v173_v23  ;;  %5703 = vpow2.f32 %v943_v37  ;;  %v253_v51 = vadd.f32 %v5972_v49, %v173_v23  ;;  %v938_v53 = vsub.f32 %v5980_v2, %v930_v52 }
 0x340   :  { %5705 = vpow2.f32 %v949_v40 }
 0x341   :  { %271 = vrot.lane.b32.xlu0 %v248_v24, %s5773_s19  ;;  %5177 = vmatpush3.msra.mxu0 %v248_v24  ;;  %v953_v54 = vmul.f32 1.442695, %v938_v53 }
 0x342   :  { %5186 = vmatprep.subr.mxu0 %v5774_v21 }
 0x343   :  { %5707 = vpow2.f32 %v953_v54 }
 0x344   :  { %5709 = vpow2.f32 %v951_v55 }
 0x345   :  { %v5992_v25 = vpop.eup %5695  ;;  %274 = vrot.lane.b32.xlu0 %v248_v24, %s5775_s20 }
 0x346   :  { %v967_v17 = vsel %vm300_vm2, %v5992_v25, 0.0  ;;  %v5698_v39 = vpop.eup %5697 }
 0x347   :  { %968 = vadd.xlane.f32.xlu1 %v967_v17  ;;  %v955_v41 = vsel %vm300_vm2, %v5698_v39, 0.0  ;;  %v5700_v42 = vpop.eup %5699 }
 0x348   :  { %v958_v43 = vsel %vm300_vm2, %v5700_v42, 0.0  ;;  %v5702_v44 = vpop.eup %5701 }
 0x349   :  { %v964_v45 = vsel %vm300_vm2, %v5702_v44, 0.0  ;;  %v5704_v46 = vpop.eup %5703 }
 0x34a   :  { %v961_v47 = vsel %vm300_vm2, %v5704_v46, 0.0  ;;  %v6002_v48 = vpop.eup %5705 }
 0x34b   :  { %v970_v50 = vsel %vm300_vm2, %v6002_v48, 0.0 }
 0x34d   :  { %v6010_v56 = vpop.eup %5707 }
 0x34e   :  { %v976_v57 = vsel %vm300_vm2, %v6010_v56, 0.0  ;;  %v6014_v58 = vpop.eup %5709 }
 0x34f   :  { %v973_v49 = vsel %vm300_vm2, %v6014_v58, 0.0 }
 0x358   :  { %277 = vrot.lane.b32.xlu1 %v248_v24, %s5772_s1 }
 0x364   :  { %956 = vadd.xlane.f32.xlu0 %v955_v41  ;;  %v295_v41 = vld [vmem:[%s6569_s7 + $0x28] sm:$0xff] }
 0x368   :  { %959 = vadd.xlane.f32.xlu0 %v958_v43 }
 0x36c   :  { %965 = vadd.xlane.f32.xlu0 %v964_v45 }
 0x370   :  { %962 = vadd.xlane.f32.xlu0 %v961_v47  ;;  %v297_v47 = vld [vmem:[%s6569_s7 + $0x38] sm:$0xff] }
 0x374   :  { %971 = vadd.xlane.f32.xlu0 %v970_v50 }
 0x38a   :  { %281 = vrot.lane.b32.xlu0 %v253_v51, %s5773_s19 }
 0x38e   :  { %284 = vrot.lane.b32.xlu0 %v253_v51, %s5775_s20 }
 0x3ad   :  { %977 = vadd.xlane.f32.xlu0 %v976_v57 }
 0x3b1   :  { %974 = vadd.xlane.f32.xlu0 %v973_v49 }
 0x3b3   :  { %v272_v59 = vpop.permute.xlu0 %271 }
 0x3b4   :  { %5182 = vmatpush3.msra.mxu1 %v272_v59 }
 0x3b5   :  { %5191 = vmatprep.subr.mxu1 %v5774_v21 }
 0x3b7   :  { %v275_v60 = vpop.permute.xlu0 %274 }
 0x3c7   :  { %287 = vrot.lane.b32.xlu0 %v253_v51, %s5772_s1 }
 0x3d4   :  { %v969_v1 = vpop.xlane.xlu1 %968 }
 0x3d8   :  { %v278_v9 = vpop.permute.xlu1 %277 }
 0x3f1   :  { %v957_v61 = vpop.xlane.xlu0 %956 }
 0x3f2   :  { %5711 = vrcp.f32 %v957_v61 }
 0x3f5   :  { %v960_v62 = vpop.xlane.xlu0 %959 }
 0x3f6   :  { %5713 = vrcp.f32 %v960_v62 }
 0x3f9   :  { %v966_v63 = vpop.xlane.xlu0 %965 }
 0x3fa   :  { %5715 = vrcp.f32 %v966_v63 }
 0x3fc   :  { %v5712_v0 = vpop.eup %5711 }
 0x3fd   :  { %v987_v2 = vmul.f32 %v5712_v0, %v5698_v39  ;;  %v963_v3 = vpop.xlane.xlu0 %962 }
 0x3fe   :  { %5717 = vrcp.f32 %v963_v3 }
 0x3ff   :  { %5179 = vmatmul.mubr.msk.f32.vlgmr.msra.gmra.mrb[12].mxu0 %vm300_vm2, %v987_v2  ;;  %5719 = vrcp.f32 %v969_v1  ;;  %v2179_v2 = vsub.s32 2, %v5885_v14 }
 0x400   :  { %v5714_v4 = vpop.eup %5713  ;;  %5187 = vmatpush3.msra.mxu0 %v275_v60  ;;  %5188 = vmatprep.mubr.msk.f32.mxu0 %vm5776_vm1, %v5774_v21 }
 0x401   :  { %v988_v5 = vmul.f32 %v5714_v4, %v5700_v42  ;;  %v972_v7 = vpop.xlane.xlu0 %971  ;;  %5196 = vmatprep.subr.mxu0 %v5774_v21 }
 0x402   :  { %5721 = vrcp.f32 %v972_v7 }
 0x403   :  { %5184 = vmatmul.mubr.msk.f32.vlgmr.msra.gmra.mrb[8].mxu1 %vm300_vm2, %v988_v5 }
 0x404   :  { %v5716_v12 = vpop.eup %5715  ;;  %5192 = vmatpush3.msra.mxu1 %v278_v9  ;;  %5193 = vmatprep.mubr.msk.f32.mxu1 %vm5776_vm1, %v5774_v21  ;;  %v2180_v9 = vrot.slane %v5891_v16, %v2179_v2 }
 0x405   :  { %v990_v13 = vmul.f32 %v5716_v12, %v5702_v44  ;;  %v282_v18 = vpop.permute.xlu0 %281  ;;  %5201 = vmatprep.subr.mxu1 %v5774_v21  ;;  %v294_v44 = vld [vmem:[%s6569_s7 + $0x20] sm:$0xff] }
 0x407   :  { %5194 = vmatmul.mubr.msk.f32.vlgmr.msra.gmra.mrb[10].mxu1 %vm300_vm2, %v990_v13 }
 0x408   :  { %v5718_v19 = vpop.eup %5717  ;;  %5202 = vmatpush3.msra.mxu1 %v282_v18  ;;  %5203 = vmatprep.mubr.msk.f32.mxu1 %vm5776_vm1, %v5774_v21 }
 0x409   :  { %v989_v20 = vmul.f32 %v5718_v19, %v5704_v46  ;;  %5211 = vmatprep.subr.mxu1 %v5774_v21  ;;  %v5720_v22 = vpop.eup %5719  ;;  %v285_v26 = vpop.permute.xlu0 %284 }
 0x40a   :  { %v991_v24 = vmul.f32 %v5720_v22, %v5992_v25 }
 0x40b   :  { %5189 = vmatmul.mubr.msk.f32.vlgmr.msra.gmra.mrb[14].mxu0 %vm300_vm2, %v989_v20 }
 0x40c   :  { %v5722_v23 = vpop.eup %5721  ;;  %5197 = vmatpush3.msra.mxu0 %v253_v51  ;;  %5198 = vmatprep.mubr.msk.f32.mxu0 %vm5776_vm1, %v5774_v21  ;;  %v296_v51 = vld [vmem:[%s6569_s7 + $0x30] sm:$0xff] }
 0x40d   :  { %v992_v17 = vmul.f32 %v5722_v23, %v6002_v48  ;;  %5206 = vmatprep.subr.mxu0 %v5774_v21 }
 0x40f   :  { %5199 = vmatmul.mubr.msk.f32.vlgmr.msra.gmra.mrb[16].mxu0 %vm300_vm2, %v991_v24  ;;  %5204 = vmatmul.mubr.msk.f32.vlgmr.msra.gmra.mrb[12].mxu1 %vm300_vm2, %v992_v17 }
 0x410   :  { %5207 = vmatpush3.msra.mxu0 %v285_v26  ;;  %5213 = vmatprep.mubr.msk.f32.mxu1 %vm5776_vm1, %v5774_v21 }
 0x411   :  { %5208 = vmatprep.mubr.msk.f32.mxu0 %vm5776_vm1, %v5774_v21  ;;  %5216 = vmatprep.subr.mxu0 %v5774_v21 }
 0x43a   :  { %v978_v27 = vpop.xlane.xlu0 %977 }
 0x43b   :  { %5723 = vrcp.f32 %v978_v27 }
 0x43e   :  { %v975_v25 = vpop.xlane.xlu0 %974 }
 0x43f   :  { %5725 = vrcp.f32 %v975_v25 }
 0x442   :  { %v288_v28 = vpop.permute.xlu0 %287 }
 0x443   :  { %5212 = vmatpush3.msra.mxu1 %v288_v28 }
 0x444   :  { %5221 = vmatprep.subr.mxu1 %v5774_v21 }
 0x445   :  { %v5724_v29 = vpop.eup %5723 }
 0x446   :  { %v994_v30 = vmul.f32 %v5724_v29, %v6010_v56 }
 0x448   :  { %5214 = vmatmul.mubr.msk.f32.vlgmr.msra.gmra.mrb[14].mxu1 %vm300_vm2, %v994_v30 }
 0x449   :  { %v5726_v31 = vpop.eup %5725  ;;  %5223 = vmatprep.mubr.msk.f32.mxu1 %vm5776_vm1, %v5774_v21  ;;  %5222 = vmatpush3.msra.mxu1 %v291_v34 }
 0x44a   :  { %v993_v32 = vmul.f32 %v5726_v31, %v6014_v58  ;;  %5231 = vmatprep.subr.mxu1 %v5774_v21 }
 0x44c   :  { %5209 = vmatmul.mubr.msk.f32.vlgmr.msra.gmra.mrb[18].mxu0 %vm300_vm2, %v993_v32 }
 0x44d   :  { %5218 = vmatprep.mubr.msk.f32.mxu0 %vm5776_vm1, %v5774_v21  ;;  %5217 = vmatpush3.msra.mxu0 %v290_v33 }
 0x44e   :  { %5226 = vmatprep.subr.mxu0 %v5774_v21 }
 0x4d2   :  { %v1064_v36 = vpop.f32.mrb[12].mxu0 }
 0x4d3   :  { %v5180_v37 = vpop.f32.mrb[13].mxu0  ;;  %5219 = vmatmul.mubr.msk.f32.vlgmr.msra.gmra.mrb[20].mxu0 %vm300_vm2, %v1064_v36 }
 0x4d4   :  { %5227 = vmatpush3.msra.mxu0 %v292_v35  ;;  %5228 = vmatprep.mubr.msk.f32.mxu0 %vm5776_vm1, %v5774_v21 }
 0x4d5   :  { %5236 = vmatprep.subr.mxu0 %v5774_v21 }
 0x4d6   :  { %v1137_v39 = vpop.f32.mrb[8].mxu1 }
 0x4d7   :  { %v5185_v40 = vpop.f32.mrb[9].mxu1  ;;  %5224 = vmatmul.mubr.msk.f32.vlgmr.msra.gmra.mrb[16].mxu1 %vm300_vm2, %v1137_v39 }
 0x4d8   :  { %5232 = vmatpush3.msra.mxu1 %v293_v38  ;;  %5233 = vmatprep.mubr.msk.f32.mxu1 %vm5776_vm1, %v5774_v21 }
 0x4d9   :  { %5241 = vmatprep.subr.mxu1 %v5774_v21 }
 0x4da   :  { %v1283_v42 = vpop.f32.mrb[10].mxu1 }
 0x4db   :  { %v5195_v43 = vpop.f32.mrb[11].mxu1  ;;  %5234 = vmatmul.mubr.msk.f32.vlgmr.msra.gmra.mrb[18].mxu1 %vm300_vm2, %v1283_v42  ;;  %v2234_v42 = vld [vmem:[%s6570_s6] sm:$0xff] }
 0x4dc   :  { %5242 = vmatpush3.msra.mxu1 %v295_v41  ;;  %5243 = vmatprep.mubr.msk.f32.mxu1 %vm5776_vm1, %v5774_v21  ;;  %v2235_v43 = vld [vmem:[%s6570_s6 + $0x8] sm:$0xff] }
 0x4dd   :  { %5251 = vmatprep.subr.mxu1 %v5774_v21 }
 0x4de   :  { %v1210_v45 = vpop.f32.mrb[14].mxu0 }
 0x4df   :  { %v5190_v46 = vpop.f32.mrb[15].mxu0  ;;  %5229 = vmatmul.mubr.msk.f32.vlgmr.msra.gmra.mrb[22].mxu0 %vm300_vm2, %v1210_v45  ;;  %v2237_v45 = vld [vmem:[%s6570_s6 + $0x18] sm:$0xff] }
 0x4e0   :  { %5237 = vmatpush3.msra.mxu0 %v294_v44  ;;  %5238 = vmatprep.mubr.msk.f32.mxu0 %vm5776_vm1, %v5774_v21  ;;  %v2236_v44 = vld [vmem:[%s6570_s6 + $0x10] sm:$0xff] }
 0x4e1   :  { %5246 = vmatprep.subr.mxu0 %v5774_v21  ;;  %v5620_v46 = vpack.i.bf16 %v2237_v45, %v2236_v44 }
 0x4e2   :  { %v1356_v48 = vpop.f32.mrb[16].mxu0  ;;  %v1429_v50 = vpop.f32.mrb[12].mxu1 }
 0x4e3   :  { %v5200_v52 = vpop.f32.mrb[17].mxu0  ;;  %v5205_v53 = vpop.f32.mrb[13].mxu1  ;;  %5239 = vmatmul.mubr.msk.f32.vlgmr.msra.gmra.mrb[24].mxu0 %vm300_vm2, %v1356_v48  ;;  %5244 = vmatmul.mubr.msk.f32.vlgmr.msra.gmra.mrb[20].mxu1 %vm300_vm2, %v1429_v50  ;;  %v51_v48 = vld [vmem:[%s6572_s3] sm:$0xff] }
 0x4e4   :  { %5252 = vmatpush3.msra.mxu1 %v297_v47  ;;  %5253 = vmatprep.mubr.msk.f32.mxu1 %vm5776_vm1, %v5774_v21  ;;  %v6144_v47 = vld [vmem:[%s6571_s2] sm:$0xff]  ;;  %v5497_v52 = vpack.c.bf16 %v2237_v45, %v2236_v44  ;;  %v2240_v53 = vsub.s32 1, %v5885_v14 }
 0x4e5   :  { %5247 = vmatpush3.msra.mxu0 %v296_v51  ;;  %5248 = vmatprep.mubr.msk.f32.mxu0 %vm5776_vm1, %v5774_v21  ;;  %v2230_v50 = vadd.f32 %v51_v48, %v6144_v47  ;;  %v5493_v51 = vpack.c.bf16 %v2235_v43, %v2234_v42 }
 0x4e7   :  { %5494 = vmatprep.subr.bf16.mxu0 %v5493_v51 }
 0x51b   :  { %v1575_v54 = vpop.f32.mrb[14].mxu1 }
 0x51c   :  { %v5215_v55 = vpop.f32.mrb[15].mxu1  ;;  %5254 = vmatmul.mubr.msk.f32.vlgmr.msra.gmra.mrb[22].mxu1 %vm300_vm2, %v1575_v54  ;;  %v6155_v54 = vrot.slane %v5891_v16, %v2240_v53 }
 0x51d   :  { %5275 = vmatprep.mubr.msk.f32.mxu1 %vm73_vm0, %v2230_v50 }
 0x51f   :  { %v1502_v56 = vpop.f32.mrb[18].mxu0 }
 0x520   :  { %v5210_v57 = vpop.f32.mrb[19].mxu0  ;;  %5249 = vmatmul.mubr.msk.f32.vlgmr.msra.gmra.mrb[26].mxu0 %vm300_vm2, %v1502_v56 }
 0x521   :  { %5496 = vmatpush3.bf16.msra.mxu0 %v5493_v51 }
 0x522   :  { %5498 = vmatprep.subr.bf16.mxu0 %v5497_v52 }
 0x525   :  { %5500 = vmatpush3.bf16.msra.mxu0 %v5497_v52 }
 0x5a6   :  { %v1648_v58 = vpop.f32.mrb[20].mxu0 }
 0x5a7   :  { %v5220_v49 = vpop.f32.mrb[21].mxu0  ;;  %v2163_v60 = vsel %vm73_vm0, %v1648_v58, 0.0 }
 0x5aa   :  { %v1721_v59 = vpop.f32.mrb[16].mxu1 }
 0x5ab   :  { %v2164_v61 = vsel %vm73_vm0, %v1721_v59, 0.0  ;;  %v5225_v62 = vpop.f32.mrb[17].mxu1 }
 0x5ac   :  { %v2165_v63 = vadd.f32 %v2164_v61, %v2163_v60  ;;  %v2218_v61 = vsub.s32 4, %v5885_v14  ;;  %v2224_v62 = vsub.s32 5, %v5885_v14 }
 0x5ae   :  { %v1867_v0 = vpop.f32.mrb[18].mxu1 }
 0x5af   :  { %v5235_v1 = vpop.f32.mrb[19].mxu1  ;;  %v2168_v12 = vsel %vm73_vm0, %v1867_v0, 0.0  ;;  %v2219_v0 = vrot.slane %v5891_v16, %v2218_v61 }
 0x5b2   :  { %v1794_v3 = vpop.f32.mrb[22].mxu0 }
 0x5b3   :  { %v2166_v4 = vsel %vm73_vm0, %v1794_v3, 0.0  ;;  %v5230_v5 = vpop.f32.mrb[23].mxu0 }
 0x5b4   :  { %v2167_v7 = vadd.f32 %v2166_v4, %v2165_v63  ;;  %v2225_v4 = vrot.slane %v5891_v16, %v2224_v62 }
 0x5b6   :  { %v2169_v13 = vadd.f32 %v2168_v12, %v2167_v7  ;;  %v1940_v18 = vpop.f32.mrb[24].mxu0  ;;  %v2013_v19 = vpop.f32.mrb[20].mxu1 }
 0x5b7   :  { %v2170_v20 = vsel %vm73_vm0, %v1940_v18, 0.0  ;;  %v2171_v22 = vsel %vm73_vm0, %v2013_v19, 0.0  ;;  %v5240_v23 = vpop.f32.mrb[25].mxu0  ;;  %v5245_v24 = vpop.f32.mrb[21].mxu1 }
 0x5b8   :  { %v2181_v17 = vadd.f32 %v2180_v9, %v2169_v13  ;;  %v2172_v26 = vadd.f32 %v2171_v22, %v2170_v20 }
 0x5ba   :  { %v2183_v27 = vadd.f32 %v2181_v17, %v5860_v6 }
 0x5bc   :  { %v2185_v25 = vsel %vm73_vm0, %v2183_v27, 0.0  ;;  %v2194_v28 = vmul.f32 %v2183_v27, %v2183_v27 }
 0x5bd   :  { %2186 = vadd.xlane.f32.xlu0 %v2185_v25 }
 0x5be   :  { %v2196_v29 = vsel %vm73_vm0, %v2194_v28, 0.0 }
 0x5c1   :  { %2197 = vadd.xlane.f32.xlu0 %v2196_v29 }
 0x5ef   :  { %v2159_v30 = vpop.f32.mrb[22].mxu1 }
 0x5f0   :  { %v5255_v31 = vpop.f32.mrb[23].mxu1  ;;  %v2175_v36 = vsel %vm73_vm0, %v2159_v30, 0.0  ;;  %v52_v30 = vld [vmem:[%s6572_s3 + $0x8] sm:$0xff] }
 0x5f1   :  { %v49_v31 = vld [vmem:[%s6571_s2 + $0x10] sm:$0xff] }
 0x5f3   :  { %v2086_v32 = vpop.f32.mrb[26].mxu0 }
 0x5f4   :  { %v2173_v33 = vsel %vm73_vm0, %v2086_v32, 0.0  ;;  %v5250_v34 = vpop.f32.mrb[27].mxu0  ;;  %v53_v32 = vld [vmem:[%s6572_s3 + $0x10] sm:$0xff] }
 0x5f5   :  { %v2174_v35 = vadd.f32 %v2173_v33, %v2172_v26  ;;  %v2232_v34 = vadd.f32 %v53_v32, %v49_v31 }
 0x5f7   :  { %v2176_v37 = vadd.f32 %v2175_v36, %v2174_v35  ;;  %v50_v35 = vld [vmem:[%s6571_s2 + $0x18] sm:$0xff] }
 0x5f8   :  { %v54_v36 = vld [vmem:[%s6572_s3 + $0x18] sm:$0xff] }
 0x5f9   :  { %v2182_v38 = vadd.f32 %v2180_v9, %v2176_v37  ;;  %v2233_v37 = vadd.f32 %v54_v36, %v50_v35 }
 0x5fb   :  { %v6120_v6 = vadd.f32 %v2182_v38, %v5874_v10  ;;  %v5615_v10 = vpack.i.bf16 %v2235_v43, %v2234_v42 }
 0x5fd   :  { %v2188_v39 = vsel %vm73_vm0, %v6120_v6, 0.0  ;;  %v2195_v40 = vmul.f32 %v6120_v6, %v6120_v6 }
 0x5fe   :  { %2189 = vadd.xlane.f32.xlu1 %v2188_v39 }
 0x5ff   :  { %v2199_v41 = vsel %vm73_vm0, %v2195_v40, 0.0 }
 0x600   :  { %2200 = vadd.xlane.f32.xlu0 %v2199_v41 }
 0x60f   :  { %5616 = vrot.lane.b32.xlu1 %v5615_v10, %s5778_s22 }
 0x613   :  { %2340 = vrot.lane.b32.xlu1 %v6155_v54, %s5778_s22 }
 0x616   :  { %5621 = vrot.lane.b32.xlu0 %v5620_v46, %s5778_s22 }
 0x617   :  { %5626 = vrot.lane.b32.xlu1 %v5615_v10, %s5777_s21 }
 0x61a   :  { %5631 = vrot.lane.b32.xlu0 %v5620_v46, %s5777_s21 }
 0x64a   :  { %v2187_v55 = vpop.xlane.xlu0 %2186 }
 0x64b   :  { %v2192_v56 = vmul.f32 0.03125, %v2187_v55 }
 0x64d   :  { %v2204_v58 = vmul.f32 %v2192_v56, %v2192_v56  ;;  %v2208_v63 = vsub.f32 %v2183_v27, %v2192_v56 }
 0x64e   :  { %v2198_v57 = vpop.xlane.xlu0 %2197 }
 0x64f   :  { %v2202_v49 = vmul.f32 0.03125, %v2198_v57 }
 0x651   :  { %v2206_v59 = vsub.f32 %v2202_v49, %v2204_v58 }
 0x653   :  { %v2210_v60 = vadd.f32 1e-05, %v2206_v59 }
 0x655   :  { %5727 = vrsqrt.f32 %v2210_v60 }
 0x65f   :  { %v5728_v1 = vpop.eup %5727 }
 0x660   :  { %v2214_v3 = vmul.f32 %v5728_v1, %v2208_v63 }
 0x662   :  { %v2220_v5 = vmul.f32 %v2219_v0, %v2214_v3 }
 0x664   :  { %v6165_v7 = vadd.f32 %v2225_v4, %v2220_v5 }
 0x666   :  { %v2228_v9 = vadd.f32 %v6165_v7, %v5865_v8  ;;  %v48_v8 = vld [vmem:[%s6571_s2 + $0x8] sm:$0xff] }
 0x667   :  { %v2231_v33 = vadd.f32 %v52_v30, %v48_v8 }
 0x668   :  { %5264 = vmatprep.mubr.msk.f32.mxu0 %vm73_vm0, %v2228_v9 }
 0x68b   :  { %v2190_v12 = vpop.xlane.xlu1 %2189 }
 0x68c   :  { %v2193_v13 = vmul.f32 0.03125, %v2190_v12 }
 0x68d   :  { %v2201_v18 = vpop.xlane.xlu0 %2200 }
 0x68e   :  { %v2205_v19 = vmul.f32 %v2193_v13, %v2193_v13  ;;  %v2203_v20 = vmul.f32 0.03125, %v2201_v18  ;;  %v2209_v38 = vsub.f32 %v6120_v6, %v2193_v13  ;;  %v5779_v6 = vmov 0.0|0.0  }
 0x68f   :  { %v5617_v22 = vpop.permute.xlu1 %5616 }
 0x690   :  { %v2207_v23 = vsub.f32 %v2203_v20, %v2205_v19  ;;  %v5619_v24 = vunpack.i.h.bf16 %v5617_v22  ;;  %v5618_v17 = vunpack.i.l.bf16 %v5617_v22 }
 0x691   :  { %v5622_v26 = vpop.permute.xlu0 %5621 }
 0x692   :  { %v2211_v27 = vadd.f32 1e-05, %v2207_v23  ;;  %v5501_v16 = vpack.c.bf16 %v5619_v24, %v5618_v17  ;;  %v5624_v25 = vunpack.i.h.bf16 %v5622_v26  ;;  %v5623_v28 = vunpack.i.l.bf16 %v5622_v26 }
 0x693   :  { %v2341_v10 = vpop.permute.xlu1 %2340 }
 0x694   :  { %5729 = vrsqrt.f32 %v2211_v27  ;;  %v5505_v29 = vpack.c.bf16 %v5624_v25, %v5623_v28  ;;  %5502 = vmatprep.subr.bf16.mxu1 %v5501_v16 }
 0x695   :  { %5504 = vmatpush3.bf16.msra.mxu1 %v5501_v16  ;;  %v5632_v45 = vpop.permute.xlu0 %5631 }
 0x696   :  { %5506 = vmatprep.subr.bf16.mxu1 %v5505_v29  ;;  %v5634_v50 = vunpack.i.h.bf16 %v5632_v45  ;;  %v5633_v51 = vunpack.i.l.bf16 %v5632_v45 }
 0x697   :  { %v5627_v44 = vpop.permute.xlu1 %5626 }
 0x698   :  { %v5629_v46 = vunpack.i.h.bf16 %v5627_v44  ;;  %v5628_v48 = vunpack.i.l.bf16 %v5627_v44  ;;  %v5513_v55 = vpack.c.bf16 %v5634_v50, %v5633_v51  ;;  %v4900_v50 = vld [vmem:[%s6573_s4] ss:$0 sm:$0xff] }
 0x699   :  { %5508 = vmatpush3.bf16.msra.mxu1 %v5505_v29 }
 0x69a   :  { %5517 = vmatprep.subr.bf16.mxu1 %v5779_v6  ;;  %v5509_v52 = vpack.c.bf16 %v5629_v46, %v5628_v48 }
 0x69c   :  { %5276 = vmatmul.mubr.msk.f32.vlgmr.msra.gmra.mrb[24].mxu1 %vm73_vm0, %v2231_v33  ;;  %5510 = vmatprep.subr.bf16.mxu0 %v5509_v52 }
 0x69d   :  { %5278 = vmatprep.mubr.msk.f32.mxu1 %vm73_vm0, %v2232_v34 }
 0x69e   :  { %v5730_v39 = vpop.eup %5729 }
 0x69f   :  { %v2215_v40 = vmul.f32 %v5730_v39, %v2209_v38 }
 0x6a0   :  { %5279 = vmatmul.mubr.msk.f32.gmra.mrb[26].mxu1 %vm73_vm0, %v2233_v37 }
 0x6a1   :  { %v2221_v41 = vmul.f32 %v2219_v0, %v2215_v40  ;;  %5299 = vmatprep.mubr.msk.f32.mxu1 %vm5776_vm1, %v5774_v21 }
 0x6a3   :  { %v6194_v42 = vadd.f32 %v2225_v4, %v2221_v41 }
 0x6a5   :  { %v2229_v43 = vadd.f32 %v6194_v42, %v5879_v11 }
 0x6a7   :  { %5265 = vmatmul.mubr.msk.f32.vlgmr.msra.gmra.mrb[28].mxu0 %vm73_vm0, %v2229_v43 }
 0x6a8   :  { %5289 = vmatprep.mubr.msk.f32.mxu0 %vm73_vm0, %v6144_v47  ;;  %5512 = vmatpush3.bf16.msra.mxu0 %v5509_v52 }
 0x6a9   :  { %5514 = vmatprep.subr.bf16.mxu0 %v5513_v55 }
 0x6ac   :  { %5516 = vmatpush3.bf16.msra.mxu0 %v5513_v55 }
 0x6ad   :  { %5521 = vmatprep.subr.bf16.mxu0 %v5779_v6 }
 0x6af   :  { %5290 = vmatmul.mubr.msk.f32.vlgmr.msra.gmra.mrb[30].mxu0 %vm73_vm0, %v48_v8 }
 0x6b0   :  { %5292 = vmatprep.mubr.msk.f32.mxu0 %vm73_vm0, %v49_v31 }
 0x6b3   :  { %5293 = vmatmul.mubr.msk.f32.gmra.mrb[32].mxu0 %vm73_vm0, %v50_v35 }
 0x6b4   :  { %5306 = vmatprep.mubr.msk.f32.mxu0 %vm5776_vm1, %v5774_v21 }
 0x76f   :  { %v5277_v11 = vpop.f32.mrb[24].mxu1 }
 0x770   :  { %v2427_v47 = vadd.f32 %v5277_v11, %v2341_v10  ;;  %v2421_v56 = vpop.f32.mrb[25].mxu1 }
 0x771   :  { %v2422_v57 = vadd.f32 %v2421_v56, %v2341_v10 }
 0x773   :  { %v5518_v58 = vpack.c.bf16 %v2427_v47, %v2422_v57  ;;  %v5280_v49 = vpop.f32.mrb[26].mxu1  ;;  %v5640_v59 = vpack.i.bf16 %v2427_v47, %v2422_v57  ;;  %v4901_v47 = vld [vmem:[%s6573_s4 + $0x1] ss:$0 sm:$0xff]  ;;  %v4902_v57 = vld [vmem:[%s6573_s4 + $0x2] ss:$0 sm:$0xff] }
 0x774   :  { %v2437_v61 = vadd.f32 %v5280_v49, %v2341_v10  ;;  %v2431_v62 = vpop.f32.mrb[27].mxu1 }
 0x775   :  { %v2432_v63 = vadd.f32 %v2431_v62, %v2341_v10  ;;  %5641 = vrot.lane.b32.xlu0 %v5640_v59, %s5775_s20  ;;  %5636 = vrot.lane.b32.xlu1 %v5640_v59, %s5773_s19 }
 0x776   :  { %5520 = vmatpush3.bf16.xpose.msk.msra.mxu1 %vm6210_vm3, %v5518_v58 }
 0x777   :  { %v5534_v0 = vpack.c.bf16 %v2437_v61, %v2432_v63  ;;  %v5650_v1 = vpack.i.bf16 %v2437_v61, %v2432_v63  ;;  %5525 = vmatprep.subr.bf16.mxu1 %v5779_v6  ;;  %v4903_v63 = vld [vmem:[%s6573_s4 + $0x3] ss:$0 sm:$0xff] }
 0x779   :  { %5646 = vrot.lane.b32.xlu1 %v5640_v59, %s5772_s1 }
 0x77a   :  { %v5266_v3 = vpop.f32.mrb[28].mxu0 }
 0x77b   :  { %v2314_v4 = vpop.f32.mrb[29].mxu0  ;;  %v2320_v9 = vadd.f32 %v5266_v3, %v6155_v54 }
 0x77c   :  { %v2315_v5 = vadd.f32 %v2314_v4, %v6155_v54 }
 0x77e   :  { %2555 = vrot.lane.b32.xlu1 %v2315_v5, %s5775_s20  ;;  %2553 = vrot.lane.b32.xlu0 %v2315_v5, %s5773_s19 }
 0x77f   :  { %5300 = vmatmul.mubr.msk.f32.vlgmr.msra.gmra.mrb[28].mxu1 %vm300_vm2, %v2315_v5 }
 0x780   :  { %5313 = vmatprep.mubr.msk.f32.mxu1 %vm5776_vm1, %v5774_v21 }
 0x782   :  { %2557 = vrot.lane.b32.xlu1 %v2315_v5, %s5772_s1  ;;  %5651 = vrot.lane.b32.xlu0 %v5650_v1, %s5773_s19  ;;  %v6240_v16 = vpop.f32.mrb[30].mxu0 }
 0x783   :  { %v6242_v25 = vpop.f32.mrb[31].mxu0 }
 0x786   :  { %5661 = vrot.lane.b32.xlu1 %v5650_v1, %s5772_s1  ;;  %5656 = vrot.lane.b32.xlu0 %v5650_v1, %s5775_s20  ;;  %v6244_v30 = vpop.f32.mrb[32].mxu0 }
 0x787   :  { %v6248_v31 = vpop.f32.mrb[33].mxu0 }
 0x78a   :  { %2562 = vrot.lane.b32.xlu1 %v2320_v9, %s5775_s20  ;;  %2560 = vrot.lane.b32.xlu0 %v2320_v9, %s5773_s19 }
 0x78e   :  { %2564 = vrot.lane.b32.xlu0 %v2320_v9, %s5772_s1 }
 0x7e7   :  { %v5642_v12 = vpop.permute.xlu0 %5641  ;;  %v5637_v13 = vpop.permute.xlu1 %5636 }
 0x7e8   :  { %v5644_v18 = vunpack.i.h.bf16 %v5642_v12  ;;  %v5643_v19 = vunpack.i.l.bf16 %v5642_v12  ;;  %v5639_v20 = vunpack.i.h.bf16 %v5637_v13  ;;  %v5638_v22 = vunpack.i.l.bf16 %v5637_v13 }
 0x7ea   :  { %v5526_v23 = vpack.c.bf16 %v5644_v18, %v5643_v19  ;;  %v5522_v24 = vpack.c.bf16 %v5639_v20, %v5638_v22  ;;  %v4905_v20 = vld [vmem:[%s6573_s4 + $0x5] ss:$0 sm:$0xff]  ;;  %v4906_v22 = vld [vmem:[%s6573_s4 + $0x6] ss:$0 sm:$0xff] }
 0x7eb   :  { %v5647_v17 = vpop.permute.xlu1 %5646 }
 0x7ec   :  { %5524 = vmatpush3.bf16.xpose.msk.msra.mxu0 %vm6210_vm3, %v5522_v24  ;;  %5528 = vmatpush3.bf16.xpose.msk.msra.mxu1 %vm6210_vm3, %v5526_v23  ;;  %v5649_v26 = vunpack.i.h.bf16 %v5647_v17  ;;  %v5648_v27 = vunpack.i.l.bf16 %v5647_v17 }
 0x7ed   :  { %5529 = vmatprep.subr.bf16.mxu0 %v5779_v6  ;;  %5533 = vmatprep.subr.bf16.mxu1 %v5779_v6 }
 0x7ee   :  { %v5530_v8 = vpack.c.bf16 %v5649_v26, %v5648_v27 }
 0x7f0   :  { %v2556_v28 = vpop.permute.xlu1 %2555  ;;  %v2554_v29 = vpop.permute.xlu0 %2553 }
 0x7f3   :  { %5307 = vmatmul.mubr.msk.f32.vlgmr.msra.gmra.mrb[34].mxu0 %vm300_vm2, %v2554_v29  ;;  %5314 = vmatmul.mubr.msk.f32.vlgmr.msra.gmra.mrb[30].mxu1 %vm300_vm2, %v2556_v28 }
 0x7f4   :  { %5532 = vmatpush3.bf16.xpose.msk.msra.mxu0 %vm6210_vm3, %v5530_v8  ;;  %v5652_v32 = vpop.permute.xlu0 %5651  ;;  %5536 = vmatpush3.bf16.xpose.msk.msra.mxu1 %vm6210_vm3, %v5534_v0  ;;  %v2558_v33 = vpop.permute.xlu1 %2557  ;;  %v4904_v0 = vld [vmem:[%s6573_s4 + $0x4] ss:$0 sm:$0xff] }
 0x7f5   :  { %5320 = vmatprep.mubr.msk.f32.mxu0 %vm5776_vm1, %v5774_v21  ;;  %5327 = vmatprep.mubr.msk.f32.mxu1 %vm5776_vm1, %v5774_v21  ;;  %v5654_v34 = vunpack.i.h.bf16 %v5652_v32  ;;  %v5653_v35 = vunpack.i.l.bf16 %v5652_v32 }
 0x7f6   :  { %5537 = vmatprep.subr.bf16.mxu0 %v5779_v6  ;;  %5541 = vmatprep.subr.bf16.mxu1 %v5779_v6 }
 0x7f7   :  { %v5538_v39 = vpack.c.bf16 %v5654_v34, %v5653_v35 }
 0x7f8   :  { %v5657_v36 = vpop.permute.xlu0 %5656  ;;  %v5662_v40 = vpop.permute.xlu1 %5661 }
 0x7f9   :  { %v5659_v37 = vunpack.i.h.bf16 %v5657_v36  ;;  %v5658_v38 = vunpack.i.l.bf16 %v5657_v36  ;;  %v5664_v43 = vunpack.i.h.bf16 %v5662_v40  ;;  %v5663_v10 = vunpack.i.l.bf16 %v5662_v40 }
 0x7fb   :  { %v5542_v41 = vpack.c.bf16 %v5659_v37, %v5658_v38  ;;  %5321 = vmatmul.mubr.msk.f32.vlgmr.msra.gmra.mrb[36].mxu0 %vm300_vm2, %v2558_v33  ;;  %5328 = vmatmul.mubr.msk.f32.vlgmr.msra.gmra.mrb[32].mxu1 %vm300_vm2, %v2320_v9  ;;  %v5546_v44 = vpack.c.bf16 %v5664_v43, %v5663_v10 }
 0x7fc   :  { %5540 = vmatpush3.bf16.xpose.msk.msra.mxu0 %vm6210_vm3, %v5538_v39  ;;  %5334 = vmatprep.mubr.msk.f32.mxu0 %vm5776_vm1, %v5774_v21  ;;  %v2561_v45 = vpop.permute.xlu0 %2560  ;;  %v2563_v46 = vpop.permute.xlu1 %2562 }
 0x7fd   :  { %5544 = vmatpush3.bf16.xpose.msk.msra.mxu1 %vm6210_vm3, %v5542_v41  ;;  %5341 = vmatprep.mubr.msk.f32.mxu1 %vm5776_vm1, %v5774_v21 }
 0x7fe   :  { %5545 = vmatprep.subr.bf16.mxu0 %v5779_v6  ;;  %5549 = vmatprep.subr.bf16.mxu1 %v5779_v6 }
 0x800   :  { %v2565_v48 = vpop.permute.xlu0 %2564 }
 0x803   :  { %5335 = vmatmul.mubr.msk.f32.vlgmr.msra.gmra.mrb[38].mxu0 %vm300_vm2, %v2561_v45 }
 0x804   :  { %5342 = vmatmul.mubr.msk.f32.vlgmr.msra.gmra.mrb[34].mxu1 %vm300_vm2, %v2563_v46  ;;  %5548 = vmatpush3.bf16.xpose.msk.msra.mxu0 %vm6210_vm3, %v5546_v44 }
 0x805   :  { %5348 = vmatprep.mubr.msk.f32.mxu0 %vm5776_vm1, %v5774_v21  ;;  %5555 = vmatprep.subr.bf16.mxu0 %v5779_v6 }
 0x806   :  { %5355 = vmatprep.mubr.msk.f32.mxu1 %vm5776_vm1, %v5774_v21 }
 0x80b   :  { %5349 = vmatmul.mubr.msk.f32.vlgmr.msra.gmra.mrb[40].mxu0 %vm300_vm2, %v2565_v48 }
 0x80c   :  { %5369 = vmatprep.mubr.msk.f32.mxu0 %vm5776_vm1, %v5774_v21 }
 0x852   :  { %v2762_v51 = vpop.f32.mrb[28].mxu1 }
 0x853   :  { %v6287_v52 = vadd.f32 %v4900_v50, %v2762_v51  ;;  %v5301_v55 = vpop.f32.mrb[29].mxu1 }
 0x855   :  { %v3299_v11 = vsel %vm3298_vm4, %v6287_v52, -inf }
 0x856   :  { %3300 = vmax.xlane.f32.xlu1 %v3299_v11 }
 0x8c6   :  { %v2838_v56 = vpop.f32.mrb[34].mxu0  ;;  %v2914_v58 = vpop.f32.mrb[30].mxu1 }
 0x8c7   :  { %v6297_v49 = vadd.f32 %v4901_v47, %v2838_v56  ;;  %v5308_v59 = vpop.f32.mrb[35].mxu0  ;;  %v5315_v60 = vpop.f32.mrb[31].mxu1  ;;  %v6299_v61 = vadd.f32 %v4902_v57, %v2914_v58  ;;  %v4907_v57 = vld [vmem:[%s6573_s4 + $0x7] ss:$0 sm:$0xff] }
 0x8c9   :  { %v3302_v62 = vsel %vm3298_vm4, %v6297_v49, -inf  ;;  %v3305_v1 = vsel %vm3298_vm4, %v6299_v61, -inf }
 0x8ca   :  { %3303 = vmax.xlane.f32.xlu0 %v3302_v62 }
 0x8ce   :  { %v2990_v3 = vpop.f32.mrb[36].mxu0  ;;  %3306 = vmax.xlane.f32.xlu0 %v3305_v1  ;;  %v3066_v4 = vpop.f32.mrb[32].mxu1 }
 0x8cf   :  { %v6311_v5 = vadd.f32 %v4903_v63, %v2990_v3  ;;  %v6313_v9 = vadd.f32 %v4904_v0, %v3066_v4  ;;  %v5322_v12 = vpop.f32.mrb[37].mxu0  ;;  %v5329_v13 = vpop.f32.mrb[33].mxu1 }
 0x8d1   :  { %v3308_v18 = vsel %vm3298_vm4, %v6311_v5, -inf  ;;  %v3311_v19 = vsel %vm3298_vm4, %v6313_v9, -inf }
 0x8d2   :  { %3309 = vmax.xlane.f32.xlu1 %v3308_v18  ;;  %3312 = vmax.xlane.f32.xlu0 %v3311_v19 }
 0x8d6   :  { %v3142_v23 = vpop.f32.mrb[38].mxu0 }
 0x8d7   :  { %v3143_v24 = vadd.f32 %v4905_v20, %v3142_v23  ;;  %v5336_v17 = vpop.f32.mrb[39].mxu0  ;;  %v3218_v26 = vpop.f32.mrb[34].mxu1 }
 0x8d8   :  { %v6325_v27 = vadd.f32 %v4906_v22, %v3218_v26  ;;  %v5343_v28 = vpop.f32.mrb[35].mxu1 }
 0x8d9   :  { %v3314_v29 = vsel %vm3298_vm4, %v3143_v24, -inf }
 0x8da   :  { %3315 = vmax.xlane.f32.xlu1 %v3314_v29  ;;  %v3317_v8 = vsel %vm3298_vm4, %v6325_v27, -inf }
 0x8db   :  { %3318 = vmax.xlane.f32.xlu0 %v3317_v8 }
 0x8de   :  { %v3294_v32 = vpop.f32.mrb[40].mxu0 }
 0x8df   :  { %v5350_v33 = vpop.f32.mrb[41].mxu0  ;;  %v3295_v60 = vadd.f32 %v4907_v57, %v3294_v32 }
 0x8e1   :  { %v3320_v63 = vsel %vm3298_vm4, %v3295_v60, -inf }
 0x8e3   :  { %v3301_v36 = vpop.xlane.xlu1 %3300 }
 0x8f1   :  { %2452 = vrot.lane.b32.xlu0 %v6155_v54, %s5777_s21 }
 0x957   :  { %v3304_v34 = vpop.xlane.xlu0 %3303 }
 0x958   :  { %v3324_v11 = vsub.f32 %v6297_v49, %v3304_v34 }
 0x95a   :  { %v3333_v47 = vmul.f32 1.442695, %v3324_v11 }
 0x95b   :  { %v3307_v35 = vpop.xlane.xlu0 %3306 }
 0x95c   :  { %v3325_v56 = vsub.f32 %v6299_v61, %v3307_v35 }
 0x95e   :  { %v3335_v58 = vmul.f32 1.442695, %v3325_v56 }
 0x95f   :  { %v3310_v37 = vpop.xlane.xlu1 %3309  ;;  %v3313_v38 = vpop.xlane.xlu0 %3312 }
 0x960   :  { %v3326_v59 = vsub.f32 %v6311_v5, %v3310_v37  ;;  %v3327_v62 = vsub.f32 %v6313_v9, %v3313_v38 }
 0x962   :  { %v3339_v0 = vmul.f32 1.442695, %v3327_v62 }
 0x967   :  { %v3316_v39 = vpop.xlane.xlu1 %3315 }
 0x968   :  { %v3328_v40 = vsub.f32 %v3143_v24, %v3316_v39  ;;  %v3319_v41 = vpop.xlane.xlu0 %3318 }
 0x969   :  { %v3329_v19 = vsub.f32 %v6325_v27, %v3319_v41 }
 0x96a   :  { %v3341_v43 = vmul.f32 1.442695, %v3328_v40 }
 0x96b   :  { %v3343_v20 = vmul.f32 1.442695, %v3329_v19 }
 0x96c   :  { %5731 = vpow2.f32 %v3341_v43  ;;  %v2453_v10 = vpop.permute.xlu0 %2452 }
 0x96d   :  { %v2534_v44 = vadd.f32 %v6242_v25, %v2453_v10  ;;  %v2539_v45 = vadd.f32 %v6240_v16, %v2453_v10  ;;  %v6335_v46 = vadd.f32 %v6248_v31, %v2453_v10  ;;  %v6338_v54 = vadd.f32 %v6244_v30, %v2453_v10 }
 0x96e   :  { %v3323_v31 = vsub.f32 %v6287_v52, %v3301_v36  ;;  %v3337_v52 = vmul.f32 1.442695, %v3326_v59 }
 0x96f   :  { %v5665_v48 = vpack.i.bf16 %v2539_v45, %v2534_v44  ;;  %v5550_v50 = vpack.c.bf16 %v2539_v45, %v2534_v44  ;;  %v6342_v51 = vpack.i.bf16 %v6338_v54, %v6335_v46  ;;  %v5562_v25 = vpack.c.bf16 %v6338_v54, %v6335_v46 }
 0x970   :  { %v3331_v55 = vmul.f32 1.442695, %v3323_v31 }
 0x971   :  { %5666 = vrot.lane.b32.xlu1 %v5665_v48, %s5773_s19  ;;  %5551 = vmatpush3.bf16.msra.mxu1 %v5550_v50 }
 0x972   :  { %5552 = vmatprep.subr.bf16.mxu1 %v5779_v6  ;;  %5733 = vpow2.f32 %v3331_v55 }
 0x973   :  { %5735 = vpow2.f32 %v3333_v47 }
 0x974   :  { %5737 = vpow2.f32 %v3335_v58 }
 0x975   :  { %5671 = vrot.lane.b32.xlu1 %v5665_v48, %s5775_s20  ;;  %5739 = vpow2.f32 %v3337_v52 }
 0x976   :  { %v6349_v16 = vpop.eup %5731  ;;  %5741 = vpow2.f32 %v3339_v0 }
 0x977   :  { %v3362_v30 = vsel %vm3298_vm4, %v6349_v16, 0.0  ;;  %5743 = vpow2.f32 %v3343_v20  ;;  %v2635_v20 = vld [vmem:[%s6574_s8 + $0x8] sm:$0xff] }
 0x978   :  { %3363 = vadd.xlane.f32.xlu0 %v3362_v30 }
 0x979   :  { %5676 = vrot.lane.b32.xlu1 %v5665_v48, %s5772_s1 }
 0x97c   :  { %v5734_v49 = vpop.eup %5733 }
 0x97d   :  { %v3347_v61 = vsel %vm3298_vm4, %v5734_v49, 0.0  ;;  %v5736_v1 = vpop.eup %5735 }
 0x97e   :  { %v3350_v3 = vsel %vm3298_vm4, %v5736_v1, 0.0  ;;  %v5738_v4 = vpop.eup %5737 }
 0x97f   :  { %v3353_v5 = vsel %vm3298_vm4, %v5738_v4, 0.0  ;;  %v6368_v12 = vpop.eup %5739 }
 0x980   :  { %v3356_v9 = vsel %vm3298_vm4, %v6368_v12, 0.0  ;;  %v6372_v13 = vpop.eup %5741 }
 0x981   :  { %v3359_v18 = vsel %vm3298_vm4, %v6372_v13, 0.0  ;;  %v6379_v22 = vpop.eup %5743 }
 0x982   :  { %v3365_v24 = vsel %vm3298_vm4, %v6379_v22, 0.0 }
 0x98e   :  { %5681 = vrot.lane.b32.xlu0 %v6342_v51, %s5773_s19 }
 0x99d   :  { %3321 = vmax.xlane.f32.xlu1 %v3320_v63 }
 0x9a1   :  { %3348 = vadd.xlane.f32.xlu1 %v3347_v61 }
 0x9a5   :  { %3351 = vadd.xlane.f32.xlu1 %v3350_v3 }
 0x9a9   :  { %3354 = vadd.xlane.f32.xlu1 %v3353_v5 }
 0x9ad   :  { %3357 = vadd.xlane.f32.xlu1 %v3356_v9 }
 0x9b1   :  { %3360 = vadd.xlane.f32.xlu1 %v3359_v18 }
 0x9c2   :  { %5686 = vrot.lane.b32.xlu1 %v6342_v51, %s5775_s20 }
 0x9e3   :  { %v5667_v23 = vpop.permute.xlu1 %5666 }
 0x9e4   :  { %v5669_v37 = vunpack.i.h.bf16 %v5667_v23  ;;  %v5668_v38 = vunpack.i.l.bf16 %v5667_v23 }
 0x9e6   :  { %3366 = vadd.xlane.f32.xlu1 %v3365_v24  ;;  %v5553_v45 = vpack.c.bf16 %v5669_v37, %v5668_v38  ;;  %v2641_v37 = vld [vmem:[%s6574_s8 + $0x38] sm:$0xff] }
 0x9e7   :  { %v5672_v17 = vpop.permute.xlu1 %5671 }
 0x9e8   :  { %v5674_v26 = vunpack.i.h.bf16 %v5672_v17  ;;  %v5673_v28 = vunpack.i.l.bf16 %v5672_v17  ;;  %v2637_v17 = vld [vmem:[%s6574_s8 + $0x18] sm:$0xff] }
 0x9ea   :  { %v5556_v29 = vpack.c.bf16 %v5674_v26, %v5673_v28 }
 0x9eb   :  { %v5677_v8 = vpop.permute.xlu1 %5676 }
 0x9ec   :  { %5557 = vmatpush3.bf16.msra.mxu0 %v5556_v29  ;;  %v5679_v48 = vunpack.i.h.bf16 %v5677_v8  ;;  %v5678_v50 = vunpack.i.l.bf16 %v5677_v8  ;;  %v2638_v29 = vld [vmem:[%s6574_s8 + $0x20] sm:$0xff] }
 0x9ed   :  { %5561 = vmatprep.subr.bf16.mxu0 %v5779_v6 }
 0x9ee   :  { %v5559_v11 = vpack.c.bf16 %v5679_v48, %v5678_v50 }
 0xa05   :  { %v3364_v41 = vpop.xlane.xlu0 %3363 }
 0xa09   :  { %v5682_v47 = vpop.permute.xlu0 %5681 }
 0xa0a   :  { %v5684_v58 = vunpack.i.h.bf16 %v5682_v47  ;;  %v5683_v59 = vunpack.i.l.bf16 %v5682_v47 }
 0xa0c   :  { %v5565_v63 = vpack.c.bf16 %v5684_v58, %v5683_v59 }
 0xa2a   :  { %v3322_v32 = vpop.xlane.xlu1 %3321 }
 0xa2b   :  { %v3330_v33 = vsub.f32 %v3295_v60, %v3322_v32 }
 0xa2d   :  { %v3345_v27 = vmul.f32 1.442695, %v3330_v33  ;;  %v2639_v33 = vld [vmem:[%s6574_s8 + $0x28] sm:$0xff] }
 0xa2e   :  { %v3349_v34 = vpop.xlane.xlu1 %3348 }
 0xa2f   :  { %5745 = vpow2.f32 %v3345_v27 }
 0xa30   :  { %5747 = vrcp.f32 %v3349_v34 }
 0xa32   :  { %v3352_v35 = vpop.xlane.xlu1 %3351 }
 0xa33   :  { %5749 = vrcp.f32 %v3352_v35  ;;  %v2640_v35 = vld [vmem:[%s6574_s8 + $0x30] sm:$0xff] }
 0xa36   :  { %v3355_v36 = vpop.xlane.xlu1 %3354 }
 0xa37   :  { %5751 = vrcp.f32 %v3355_v36 }
 0xa39   :  { %v6384_v39 = vpop.eup %5745 }
 0xa3a   :  { %v5748_v40 = vpop.eup %5747  ;;  %v3358_v43 = vpop.xlane.xlu1 %3357  ;;  %v3368_v10 = vsel %vm3298_vm4, %v6384_v39, 0.0 }
 0xa3b   :  { %v3379_v44 = vmul.f32 %v5748_v40, %v5734_v49  ;;  %5753 = vrcp.f32 %v3358_v43  ;;  %3369 = vadd.xlane.f32.xlu1 %v3368_v10 }
 0xa3c   :  { %5755 = vrcp.f32 %v3364_v41 }
 0xa3d   :  { %v5750_v30 = vpop.eup %5749  ;;  %5356 = vmatmul.mubr.msk.f32.vlgmr.msra.gmra.mrb[36].mxu1 %vm3298_vm4, %v3379_v44 }
 0xa3e   :  { %v3380_v31 = vmul.f32 %v5750_v30, %v5736_v1  ;;  %5554 = vmatpush3.bf16.msra.mxu1 %v5553_v45  ;;  %v3361_v55 = vpop.xlane.xlu1 %3360  ;;  %5362 = vmatprep.mubr.msk.f32.mxu1 %vm5776_vm1, %v5774_v21 }
 0xa3f   :  { %5757 = vrcp.f32 %v3361_v55  ;;  %5558 = vmatprep.subr.bf16.mxu1 %v5779_v6 }
 0xa41   :  { %v5752_v56 = vpop.eup %5751  ;;  %5363 = vmatmul.mubr.msk.f32.vlgmr.msra.gmra.mrb[38].mxu1 %vm3298_vm4, %v3380_v31 }
 0xa42   :  { %v3381_v57 = vmul.f32 %v5752_v56, %v5738_v4  ;;  %5560 = vmatpush3.bf16.msra.mxu1 %v5559_v11  ;;  %5376 = vmatprep.mubr.msk.f32.mxu1 %vm5776_vm1, %v5774_v21  ;;  %v5687_v60 = vpop.permute.xlu1 %5686 }
 0xa43   :  { %5564 = vmatprep.subr.bf16.mxu1 %v5779_v6  ;;  %v5689_v49 = vunpack.i.h.bf16 %v5687_v60  ;;  %v5688_v0 = vunpack.i.l.bf16 %v5687_v60  ;;  %v5771_v60 = vld [vmem:[%s6568_s11] sm:$0xff] }
 0xa44   :  { %5370 = vmatmul.mubr.msk.f32.vlgmr.msra.gmra.mrb[42].mxu0 %vm3298_vm4, %v3381_v57 }
 0xa45   :  { %v5754_v52 = vpop.eup %5753  ;;  %5563 = vmatpush3.bf16.msra.mxu0 %v5562_v25  ;;  %5383 = vmatprep.mubr.msk.f32.mxu0 %vm5776_vm1, %v5774_v21  ;;  %v5568_v25 = vpack.c.bf16 %v5689_v49, %v5688_v0 }
 0xa46   :  { %v3382_v62 = vmul.f32 %v5754_v52, %v6368_v12  ;;  %5567 = vmatprep.subr.bf16.mxu0 %v5779_v6  ;;  %v5756_v61 = vpop.eup %5755 }
 0xa47   :  { %v3384_v54 = vmul.f32 %v5756_v61, %v6349_v16 }
 0xa48   :  { %5377 = vmatmul.mubr.msk.f32.vlgmr.msra.gmra.mrb[40].mxu1 %vm3298_vm4, %v3382_v62 }
 0xa49   :  { %v5758_v1 = vpop.eup %5757  ;;  %5566 = vmatpush3.bf16.msra.mxu1 %v5565_v63  ;;  %5390 = vmatprep.mubr.msk.f32.mxu1 %vm5776_vm1, %v5774_v21 }
 0xa4a   :  { %v3383_v46 = vmul.f32 %v5758_v1, %v6372_v13  ;;  %5570 = vmatprep.subr.bf16.mxu1 %v5779_v6 }
 0xa4c   :  { %5691 = vrot.lane.b32.xlu1 %v6342_v51, %s5772_s1  ;;  %5384 = vmatmul.mubr.msk.f32.vlgmr.msra.gmra.mrb[44].mxu0 %vm3298_vm4, %v3383_v46  ;;  %v2634_v51 = vld [vmem:[%s6574_s8] sm:$0xff] }
 0xa4d   :  { %5391 = vmatmul.mubr.msk.f32.vlgmr.msra.gmra.mrb[42].mxu1 %vm3298_vm4, %v3384_v54  ;;  %5569 = vmatpush3.bf16.msra.mxu0 %v5568_v25 }
 0xa4e   :  { %5397 = vmatprep.mubr.msk.f32.mxu0 %vm5776_vm1, %v5774_v21  ;;  %5404 = vmatprep.mubr.msk.f32.mxu1 %vm5776_vm1, %v5774_v21 }
 0xa4f   :  { %5407 = vmatprep.subr.mxu0 %v5774_v21 }
 0xa73   :  { %v3367_v6 = vpop.xlane.xlu1 %3366 }
 0xa74   :  { %5759 = vrcp.f32 %v3367_v6 }
 0xa7e   :  { %v5760_v16 = vpop.eup %5759 }
 0xa7f   :  { %v3385_v3 = vmul.f32 %v5760_v16, %v6379_v22  ;;  %v2636_v22 = vld [vmem:[%s6574_s8 + $0x10] sm:$0xff] }
 0xa81   :  { %5398 = vmatmul.mubr.msk.f32.vlgmr.msra.gmra.mrb[46].mxu0 %vm3298_vm4, %v3385_v3 }
 0xa82   :  { %5409 = vmatprep.mubr.msk.f32.mxu0 %vm5776_vm1, %v5774_v21  ;;  %5408 = vmatpush3.msra.mxu0 %v2634_v51 }
 0xa83   :  { %5417 = vmatprep.subr.mxu0 %v5774_v21 }
 0xac8   :  { %v3370_v4 = vpop.xlane.xlu1 %3369 }
 0xac9   :  { %5761 = vrcp.f32 %v3370_v4 }
 0xacc   :  { %v5692_v5 = vpop.permute.xlu1 %5691 }
 0xacd   :  { %v5694_v12 = vunpack.i.h.bf16 %v5692_v5  ;;  %v5693_v9 = vunpack.i.l.bf16 %v5692_v5 }
 0xacf   :  { %v5571_v13 = vpack.c.bf16 %v5694_v12, %v5693_v9 }
 0xad1   :  { %5572 = vmatpush3.bf16.msra.mxu1 %v5571_v13 }
 0xad2   :  { %5412 = vmatprep.subr.mxu1 %v5774_v21 }
 0xad3   :  { %v5762_v18 = vpop.eup %5761 }
 0xad4   :  { %v3386_v19 = vmul.f32 %v5762_v18, %v6384_v39 }
 0xad6   :  { %5405 = vmatmul.mubr.msk.f32.vlgmr.msra.gmra.mrb[44].mxu1 %vm3298_vm4, %v3386_v19 }
 0xad7   :  { %5413 = vmatpush3.msra.mxu1 %v2635_v20  ;;  %5414 = vmatprep.mubr.msk.f32.mxu1 %vm5776_vm1, %v5774_v21 }
 0xad8   :  { %5422 = vmatprep.subr.mxu1 %v5774_v21 }
 0xb10   :  { %v3456_v23 = vpop.f32.mrb[36].mxu1 }
 0xb11   :  { %v5357_v24 = vpop.f32.mrb[37].mxu1  ;;  %5410 = vmatmul.mubr.msk.f32.vlgmr.msra.gmra.mrb[48].mxu0 %vm300_vm2, %v3456_v23 }
 0xb12   :  { %5418 = vmatpush3.msra.mxu0 %v2636_v22  ;;  %5419 = vmatprep.mubr.msk.f32.mxu0 %vm5776_vm1, %v5774_v21 }
 0xb13   :  { %5427 = vmatprep.subr.mxu0 %v5774_v21 }
 0xb14   :  { %v3529_v26 = vpop.f32.mrb[38].mxu1 }
 0xb15   :  { %v5364_v28 = vpop.f32.mrb[39].mxu1  ;;  %5415 = vmatmul.mubr.msk.f32.vlgmr.msra.gmra.mrb[46].mxu1 %vm300_vm2, %v3529_v26 }
 0xb16   :  { %5423 = vmatpush3.msra.mxu1 %v2637_v17  ;;  %5424 = vmatprep.mubr.msk.f32.mxu1 %vm5776_vm1, %v5774_v21 }
 0xb17   :  { %v3602_v8 = vpop.f32.mrb[42].mxu0  ;;  %5432 = vmatprep.subr.mxu1 %v5774_v21 }
 0xb18   :  { %v5371_v32 = vpop.f32.mrb[43].mxu0  ;;  %5420 = vmatmul.mubr.msk.f32.vlgmr.msra.gmra.mrb[50].mxu0 %vm300_vm2, %v3602_v8 }
 0xb19   :  { %5428 = vmatpush3.msra.mxu0 %v2638_v29  ;;  %5429 = vmatprep.mubr.msk.f32.mxu0 %vm5776_vm1, %v5774_v21 }
 0xb1a   :  { %5437 = vmatprep.subr.mxu0 %v5774_v21 }
 0xb1b   :  { %v3675_v27 = vpop.f32.mrb[40].mxu1 }
 0xb1c   :  { %v5378_v34 = vpop.f32.mrb[41].mxu1  ;;  %5425 = vmatmul.mubr.msk.f32.vlgmr.msra.gmra.mrb[48].mxu1 %vm300_vm2, %v3675_v27 }
 0xb1d   :  { %5433 = vmatpush3.msra.mxu1 %v2639_v33  ;;  %5434 = vmatprep.mubr.msk.f32.mxu1 %vm5776_vm1, %v5774_v21 }
 0xb1e   :  { %5442 = vmatprep.subr.mxu1 %v5774_v21 }
 0xb1f   :  { %v3748_v36 = vpop.f32.mrb[44].mxu0 }
 0xb20   :  { %v3821_v38 = vpop.f32.mrb[42].mxu1  ;;  %v5385_v39 = vpop.f32.mrb[45].mxu0  ;;  %5430 = vmatmul.mubr.msk.f32.vlgmr.msra.gmra.mrb[52].mxu0 %vm300_vm2, %v3748_v36  ;;  %v4609_v36 = vsub.s32 6, %v5885_v14 }
 0xb21   :  { %v5392_v40 = vpop.f32.mrb[43].mxu1  ;;  %5435 = vmatmul.mubr.msk.f32.vlgmr.msra.gmra.mrb[50].mxu1 %vm300_vm2, %v3821_v38  ;;  %5438 = vmatpush3.msra.mxu0 %v2640_v35 }
 0xb22   :  { %5439 = vmatprep.mubr.msk.f32.mxu0 %vm5776_vm1, %v5774_v21  ;;  %5443 = vmatpush3.msra.mxu1 %v2641_v37  ;;  %v4615_v37 = vsub.s32 7, %v5885_v14  ;;  %v4610_v38 = vrot.slane %v5771_v60, %v4609_v36 }
 0xb23   :  { %5444 = vmatprep.mubr.msk.f32.mxu1 %vm5776_vm1, %v5774_v21  ;;  %v4571_v21 = vsub.s32 3, %v5885_v14 }
 0xb25   :  { %v4572_v52 = vrot.slane %v5771_v60, %v4571_v21 }
 0xb54   :  { %v3894_v41 = vpop.f32.mrb[46].mxu0 }
 0xb55   :  { %v5399_v43 = vpop.f32.mrb[47].mxu0  ;;  %5440 = vmatmul.mubr.msk.f32.vlgmr.msra.gmra.mrb[54].mxu0 %vm300_vm2, %v3894_v41  ;;  %v4616_v41 = vrot.slane %v5771_v60, %v4615_v37  ;;  %v4715_v60 = vld [vmem:[%s6576_s10 + $0x28] sm:$0xff] }
 0xba9   :  { %v3967_v10 = vpop.f32.mrb[44].mxu1 }
 0xbaa   :  { %v5406_v44 = vpop.f32.mrb[45].mxu1  ;;  %5445 = vmatmul.mubr.msk.f32.vlgmr.msra.gmra.mrb[52].mxu1 %vm300_vm2, %v3967_v10 }
 0xbab   :  { %v4619_v44 = vld [vmem:[%s6575_s9] sm:$0xff] }
 0xbe4   :  { %v4040_v45 = vpop.f32.mrb[48].mxu0 }
 0xbe5   :  { %v5411_v48 = vpop.f32.mrb[49].mxu0  ;;  %v4555_v30 = vsel %vm73_vm0, %v4040_v45, 0.0  ;;  %v4620_v45 = vld [vmem:[%s6575_s9 + $0x8] sm:$0xff] }
 0xbe6   :  { %v5573_v48 = vpack.c.bf16 %v4620_v45, %v4619_v44 }
 0xbe8   :  { %v4113_v50 = vpop.f32.mrb[46].mxu1  ;;  %5574 = vmatprep.subr.bf16.mxu0 %v5573_v48 }
 0xbe9   :  { %v4556_v31 = vsel %vm73_vm0, %v4113_v50, 0.0  ;;  %v5416_v55 = vpop.f32.mrb[47].mxu1  ;;  %v4621_v50 = vld [vmem:[%s6575_s9 + $0x10] sm:$0xff]  ;;  %5576 = vmatpush3.bf16.msra.mxu0 %v5573_v48 }
 0xbea   :  { %v4557_v11 = vadd.f32 %v4556_v31, %v4555_v30  ;;  %v4622_v30 = vld [vmem:[%s6575_s9 + $0x18] sm:$0xff]  ;;  %v4710_v55 = vld [vmem:[%s6576_s10] sm:$0xff] }
 0xbeb   :  { %v4186_v47 = vpop.f32.mrb[50].mxu0  ;;  %v5577_v31 = vpack.c.bf16 %v4622_v30, %v4621_v50 }
 0xbec   :  { %v4558_v56 = vsel %vm73_vm0, %v4186_v47, 0.0  ;;  %v5421_v57 = vpop.f32.mrb[51].mxu0  ;;  %v4712_v47 = vld [vmem:[%s6576_s10 + $0x10] sm:$0xff] }
 0xbed   :  { %v4559_v58 = vadd.f32 %v4558_v56, %v4557_v11  ;;  %5578 = vmatprep.subr.bf16.mxu0 %v5577_v31  ;;  %v4711_v11 = vld [vmem:[%s6576_s10 + $0x8] sm:$0xff]  ;;  %v4713_v57 = vld [vmem:[%s6576_s10 + $0x18] sm:$0xff] }
 0xbee   :  { %5580 = vmatpush3.bf16.msra.mxu0 %v5577_v31  ;;  %v5581_v56 = vpack.c.bf16 %v4711_v11, %v4710_v55 }
 0xbef   :  { %v4259_v59 = vpop.f32.mrb[48].mxu1 }
 0xbf0   :  { %v4560_v62 = vsel %vm73_vm0, %v4259_v59, 0.0  ;;  %v5426_v63 = vpop.f32.mrb[49].mxu1  ;;  %v4714_v59 = vld [vmem:[%s6576_s10 + $0x20] sm:$0xff]  ;;  %5582 = vmatprep.subr.bf16.mxu1 %v5581_v56 }
 0xbf1   :  { %v4561_v49 = vadd.f32 %v4560_v62, %v4559_v58  ;;  %v5585_v58 = vpack.c.bf16 %v4713_v57, %v4712_v47  ;;  %5584 = vmatpush3.bf16.msra.mxu1 %v5581_v56 }
 0xbf3   :  { %v4573_v0 = vadd.f32 %v4572_v52, %v4561_v49  ;;  %v4332_v61 = vpop.f32.mrb[52].mxu0  ;;  %5586 = vmatprep.subr.bf16.mxu1 %v5585_v58 }
 0xbf4   :  { %v4562_v1 = vsel %vm73_vm0, %v4332_v61, 0.0  ;;  %v4405_v46 = vpop.f32.mrb[50].mxu1  ;;  %v5431_v54 = vpop.f32.mrb[53].mxu0 }
 0xbf5   :  { %v4563_v25 = vsel %vm73_vm0, %v4405_v46, 0.0  ;;  %v5436_v6 = vpop.f32.mrb[51].mxu1  ;;  %v4575_v16 = vadd.f32 %v4573_v0, %v6165_v7  ;;  %5588 = vmatpush3.bf16.msra.mxu1 %v5585_v58 }
 0xbf6   :  { %v4564_v3 = vadd.f32 %v4563_v25, %v4562_v1 }
 0xbf7   :  { %v4577_v51 = vsel %vm73_vm0, %v4575_v16, 0.0  ;;  %v4585_v4 = vmul.f32 %v4575_v16, %v4575_v16 }
 0xbf8   :  { %4578 = vadd.xlane.f32.xlu1 %v4577_v51  ;;  %v4716_v51 = vld [vmem:[%s6576_s10 + $0x30] sm:$0xff] }
 0xbf9   :  { %v4587_v5 = vsel %vm73_vm0, %v4585_v4, 0.0  ;;  %v4717_v4 = vld [vmem:[%s6576_s10 + $0x38] sm:$0xff] }
 0xbfc   :  { %4588 = vadd.xlane.f32.xlu1 %v4587_v5  ;;  %v5593_v5 = vpack.c.bf16 %v4717_v4, %v4716_v51 }
 0xc28   :  { %v4478_v12 = vpop.f32.mrb[54].mxu0 }
 0xc29   :  { %v4565_v9 = vsel %vm73_vm0, %v4478_v12, 0.0  ;;  %v5441_v13 = vpop.f32.mrb[55].mxu0  ;;  %v42_v12 = vld [vmem:[%s6568_s11 + $0x8] sm:$0xf] }
 0xc2a   :  { %v4566_v18 = vadd.f32 %v4565_v9, %v4564_v3  ;;  %v4626_v9 = vrot.slane %v42_v12, %v2179_v2  ;;  %v4839_v30 = vrot.slane %v42_v12, %v71_v15  ;;  %v4845_v56 = vrot.slane %v42_v12, %v2240_v53 }
 0xc7d   :  { %v4551_v19 = vpop.f32.mrb[52].mxu1 }
 0xc7e   :  { %v4567_v20 = vsel %vm73_vm0, %v4551_v19, 0.0  ;;  %v5446_v22 = vpop.f32.mrb[53].mxu1 }
 0xc7f   :  { %v4568_v23 = vadd.f32 %v4567_v20, %v4566_v18 }
 0xc81   :  { %v4574_v24 = vadd.f32 %v4572_v52, %v4568_v23  ;;  %v5589_v52 = vpack.c.bf16 %v4715_v60, %v4714_v59 }
 0xc83   :  { %v4576_v7 = vadd.f32 %v4574_v24, %v6194_v42  ;;  %5590 = vmatprep.subr.bf16.mxu1 %v5589_v52  ;;  %v4721_v24 = vrot.slane %v42_v12, %v4571_v21 }
 0xc84   :  { %5592 = vmatpush3.bf16.msra.mxu1 %v5589_v52 }
 0xc85   :  { %v4579_v17 = vpop.xlane.xlu1 %4578  ;;  %v4580_v26 = vsel %vm73_vm0, %v4576_v7, 0.0  ;;  %v4586_v28 = vmul.f32 %v4576_v7, %v4576_v7  ;;  %5594 = vmatprep.subr.bf16.mxu1 %v5593_v5 }
 0xc86   :  { %v4583_v29 = vmul.f32 0.03125, %v4579_v17  ;;  %4581 = vadd.xlane.f32.xlu0 %v4580_v26 }
 0xc87   :  { %v4590_v8 = vsel %vm73_vm0, %v4586_v28, 0.0 }
 0xc88   :  { %4591 = vadd.xlane.f32.xlu1 %v4590_v8  ;;  %v4595_v33 = vmul.f32 %v4583_v29, %v4583_v29  ;;  %v4599_v42 = vsub.f32 %v4575_v16, %v4583_v29  ;;  %5596 = vmatpush3.bf16.msra.mxu1 %v5593_v5 }
 0xc89   :  { %v4589_v32 = vpop.xlane.xlu1 %4588 }
 0xc8a   :  { %v4593_v27 = vmul.f32 0.03125, %v4589_v32 }
 0xc8c   :  { %v4597_v34 = vsub.f32 %v4593_v27, %v4595_v33 }
 0xc8e   :  { %v4601_v35 = vadd.f32 1e-05, %v4597_v34 }
 0xc90   :  { %5763 = vrsqrt.f32 %v4601_v35 }
 0xc9a   :  { %v5764_v39 = vpop.eup %5763 }
 0xc9b   :  { %v4605_v40 = vmul.f32 %v5764_v39, %v4599_v42 }
 0xc9d   :  { %v4611_v43 = vmul.f32 %v4610_v38, %v4605_v40 }
 0xc9f   :  { %v6500_v10 = vadd.f32 %v4616_v41, %v4611_v43 }
 0xca1   :  { %5455 = vmatprep.mubr.msk.f32.mxu0 %vm73_vm0, %v6500_v10 }
 0xd13   :  { %v4582_v62 = vpop.xlane.xlu0 %4581 }
 0xd14   :  { %v4584_v63 = vmul.f32 0.03125, %v4582_v62 }
 0xd15   :  { %v4592_v49 = vpop.xlane.xlu1 %4591 }
 0xd16   :  { %v4596_v0 = vmul.f32 %v4584_v63, %v4584_v63  ;;  %v4594_v61 = vmul.f32 0.03125, %v4592_v49  ;;  %v4600_v54 = vsub.f32 %v4576_v7, %v4584_v63 }
 0xd18   :  { %v4598_v1 = vsub.f32 %v4594_v61, %v4596_v0 }
 0xd1a   :  { %v4602_v46 = vadd.f32 1e-05, %v4598_v1 }
 0xd1c   :  { %5765 = vrsqrt.f32 %v4602_v46 }
 0xd26   :  { %v5766_v25 = vpop.eup %5765 }
 0xd27   :  { %v4606_v6 = vmul.f32 %v5766_v25, %v4600_v54 }
 0xd29   :  { %v4612_v16 = vmul.f32 %v4610_v38, %v4606_v6 }
 0xd2b   :  { %v4618_v3 = vadd.f32 %v4616_v41, %v4612_v16 }
 0xd2d   :  { %5456 = vmatmul.mubr.msk.f32.vlgmr.msra.gmra.mrb[56].mxu0 %vm73_vm0, %v4618_v3 }
 0xe00   :  { %v5457_v13 = vpop.f32.mrb[56].mxu0 }
 0xe01   :  { %v4705_v18 = vadd.f32 %v5457_v13, %v4626_v9  ;;  %v4699_v19 = vpop.f32.mrb[57].mxu0 }
 0xe02   :  { %v4700_v20 = vadd.f32 %v4699_v19, %v4626_v9 }
 0xe03   :  { %v4709_v23 = vmax.f32 %v4705_v18, 0.0 }
 0xe04   :  { %v4708_v22 = vmax.f32 %v4700_v20, 0.0 }
 0xe06   :  { %5474 = vmatprep.mubr.msk.f32.mxu1 %vm4722_vm5, %v4708_v22 }
 0xe07   :  { %5475 = vmatmul.mubr.msk.f32.vlgmr.msra.gmra.mrb[54].mxu1 %vm4722_vm5, %v4709_v23 }
 0xeda   :  { %v5476_v7 = vpop.f32.mrb[54].mxu1 }
 0xedb   :  { %v4801_v17 = vadd.f32 %v5476_v7, %v4721_v24  ;;  %v4795_v26 = vpop.f32.mrb[55].mxu1 }
 0xedc   :  { %v4796_v28 = vadd.f32 %v4795_v26, %v4721_v24 }
 0xedd   :  { %v4805_v29 = vadd.f32 %v4801_v17, %v4618_v3 }
 0xede   :  { %v4804_v8 = vadd.f32 %v4796_v28, %v6500_v10 }
 0xedf   :  { %v4809_v2 = vsel %vm73_vm0, %v4805_v29, 0.0  ;;  %v4815_v32 = vmul.f32 %v4805_v29, %v4805_v29 }
 0xee0   :  { %4810 = vadd.xlane.f32.xlu1 %v4809_v2  ;;  %v4806_v33 = vsel %vm73_vm0, %v4804_v8, 0.0  ;;  %v4814_v27 = vmul.f32 %v4804_v8, %v4804_v8 }
 0xee1   :  { %4807 = vadd.xlane.f32.xlu0 %v4806_v33  ;;  %v4819_v34 = vsel %vm73_vm0, %v4815_v32, 0.0 }
 0xee2   :  { %v4816_v21 = vsel %vm73_vm0, %v4814_v27, 0.0 }
 0xee4   :  { %4820 = vadd.xlane.f32.xlu1 %v4819_v34 }
 0xee5   :  { %4817 = vadd.xlane.f32.xlu0 %v4816_v21 }
 0xf6d   :  { %v4811_v35 = vpop.xlane.xlu1 %4810 }
 0xf6e   :  { %v4813_v36 = vmul.f32 0.03125, %v4811_v35  ;;  %v4808_v37 = vpop.xlane.xlu0 %4807 }
 0xf6f   :  { %v4812_v42 = vmul.f32 0.03125, %v4808_v37 }
 0xf70   :  { %v4825_v39 = vmul.f32 %v4813_v36, %v4813_v36  ;;  %v4829_v31 = vsub.f32 %v4805_v29, %v4813_v36 }
 0xf71   :  { %v4821_v38 = vpop.xlane.xlu1 %4820  ;;  %v4824_v43 = vmul.f32 %v4812_v42, %v4812_v42  ;;  %v4828_v11 = vsub.f32 %v4804_v8, %v4812_v42 }
 0xf72   :  { %v4823_v40 = vmul.f32 0.03125, %v4821_v38  ;;  %v4818_v41 = vpop.xlane.xlu0 %4817 }
 0xf73   :  { %v4822_v10 = vmul.f32 0.03125, %v4818_v41 }
 0xf74   :  { %v4827_v44 = vsub.f32 %v4823_v40, %v4825_v39 }
 0xf75   :  { %v4826_v45 = vsub.f32 %v4822_v10, %v4824_v43 }
 0xf76   :  { %v4831_v48 = vadd.f32 1e-05, %v4827_v44 }
 0xf77   :  { %v4830_v50 = vadd.f32 1e-05, %v4826_v45 }
 0xf78   :  { %5767 = vrsqrt.f32 %v4831_v48 }
 0xf79   :  { %5769 = vrsqrt.f32 %v4830_v50 }
 0xf82   :  { %v5768_v55 = vpop.eup %5767 }
 0xf83   :  { %v5770_v47 = vpop.eup %5769  ;;  %v4835_v57 = vmul.f32 %v5768_v55, %v4829_v31 }
 0xf84   :  { %v4834_v58 = vmul.f32 %v5770_v47, %v4828_v11 }
 0xf85   :  { %v4841_v59 = vmul.f32 %v4839_v30, %v4835_v57 }
 0xf86   :  { %v4840_v60 = vmul.f32 %v4839_v30, %v4834_v58 }
 0xf87   :  { %v4847_v52 = vadd.f32 %v4845_v56, %v4841_v59 }
 0xf88   :  { %v4846_v62 = vadd.f32 %v4845_v56, %v4840_v60 }
 0xf89   :  { %4849 = vst.msk [vmem:[%s6577_s12 + $0x8] sm:$0xff] %vm73_vm0, %v4847_v52 }
 0xf8a   :  { %4848 = vst.msk [vmem:[%s6577_s12] sm:$0xff] %vm73_vm0, %v4846_v62 }

</bundles_post_ra>
